<compile_context>
chip_gen: v7x
topology: tpu7x:2x2x1
jax: 0.10.0
libtpu: 0.0.40
codegen_flags: <defaults>
</compile_context>

<pallas_src>
import numpy as np
import jax
import jax.numpy as jnp
from jax import lax
from jax.experimental import pallas as pl
from jax.experimental.pallas import tpu as pltpu

# ----------------------------- configuration --------------------------------
DIM = 16                        # channels
HEAD_NUM = 4
HEAD_DIM = DIM // HEAD_NUM
GROUP_CHANS = DIM // 4
WINDOW = 7                      # avg-pool window / stride
H = 14
W = 14
HW = H * W                      # 196
HWP = 256                       # lane-padded spatial length (multiple of 128)
KS = (3, 5, 7, 9)               # group_kernel_sizes
K_MAX = max(KS)                 # 9
PAD = K_MAX // 2                # 4
SPAN = H + 2 * PAD + W          # 36 : fused conv output length (h block | gap | w block)
W_OFF = H + 2 * PAD             # 22 : offset of the w-branch inside the span
CONV_COLS = SPAN + K_MAX - 1    # 44 : zero-padded conv input length
LP = (H // WINDOW) * (W // WINDOW)   # 4 pooled positions
EPS = 1e-5                      # GroupNorm eps (PyTorch default)
SCALER = float(HEAD_DIM) ** (-0.5)
MAX_MXU_ROWS = 128              # cap sublane batching at the v5e MXU height


# --------------------------------- kernel -----------------------------------
def scsa_kernel(x_ref, wslab_ref, convm_ref, poolm_ref, expm_ref, li_ref,
                ex4_ref, sq_ref, colv_ref, o_ref):
    x = x_ref[0]                               # (ROWS, 256) f32, lane-dense & padded
    gn_blk = sq_ref[0]                         # (ROWS, ROWS) GN(4) group pool / (Cg*H)
    head_mask = sq_ref[1]                      # (ROWS, ROWS) per-sample/head additive mask
    samp_blk = sq_ref[2]                       # (ROWS, ROWS) GN(1,C) sample pool / (C*LP)
    colv = colv_ref[...]                       # (ROWS, 6*LP) q/k/v scale|shift (GN affine folded)

    # ---- means over W and over H, emitted directly in the zero-padded conv layout ----
    padded = jnp.dot(x, convm_ref[...], preferred_element_type=jnp.float32)  # (ROWS, 44)

    # ---- fused 9-tap depthwise conv (h- and w-branches share one span) ----------------
    acc = wslab_ref[K_MAX]                     # conv bias, pre-broadcast over the span
    for t in range(K_MAX):                     # 9 FMAs, no per-tap lane broadcast
        acc = acc + wslab_ref[t] * padded[:, t:t + SPAN]

    # ---- GroupNorm(4) for both branches in span layout, sigmoid gate -------------------
    cat = jnp.concatenate([acc, acc * acc], axis=1)                          # (ROWS, 72)
    stats4 = jnp.dot(cat, li_ref[...], preferred_element_type=jnp.float32)   # per-row branch sums
    gm4 = jnp.dot(gn_blk, stats4, preferred_element_type=jnp.float32)        # [mu_h mu_w m2_h m2_w]
    mom = jnp.dot(gm4, ex4_ref[...], preferred_element_type=jnp.float32)     # (ROWS, 256) per-lane
    mu_s = mom[:, :SPAN]
    m2_s = mom[:, 128:128 + SPAN]
    rstd = lax.rsqrt(jnp.maximum(m2_s - mu_s * mu_s, 0.0) + EPS)
    attn_span = jax.nn.sigmoid((acc - mu_s) * rstd * wslab_ref[K_MAX + 1]
                               + wslab_ref[K_MAX + 2])          # gap lanes harmless (expm rows 0)

    # ---- both gate broadcasts in ONE matmul, then gate x -------------------------------
    gates = jnp.dot(attn_span, expm_ref[...], preferred_element_type=jnp.float32)  # (ROWS, 512)
    xg = x * gates[:, :HWP] * gates[:, HWP:]

    # ---- 7x7 avg-pool + per-sample GroupNorm(1, C) -------------------------------------
    y = jnp.dot(xg, poolm_ref[...], preferred_element_type=jnp.float32)      # (ROWS, LP)
    st = jnp.concatenate([jnp.sum(y, axis=1, keepdims=True),
                          jnp.sum(y * y, axis=1, keepdims=True)], axis=1)    # (ROWS, 2)
    gm = jnp.dot(samp_blk, st, preferred_element_type=jnp.float32)           # per-sample stats
    mu = gm[:, 0:1]
    var = jnp.maximum(gm[:, 1:2] - mu * mu, 0.0)
    ynorm = (y - mu) * lax.rsqrt(var + EPS)

    # ---- per-channel q/k/v (GroupNorm(1,C) affine folded into scale/shift) -------------
    q = ynorm * colv[:, 0:LP] + colv[:, LP:2 * LP]
    k = ynorm * colv[:, 2 * LP:3 * LP] + colv[:, 3 * LP:4 * LP]
    v = ynorm * colv[:, 4 * LP:5 * LP] + colv[:, 5 * LP:6 * LP]

    # ---- multi-head channel attention (block-diag mask == per-sample/per-head softmax) -
    s = jnp.einsum('dl,el->de', q, k,
                   preferred_element_type=jnp.float32) * SCALER + head_mask
    e = jnp.exp(s - jnp.max(s, axis=-1, keepdims=True))
    p = e / jnp.sum(e, axis=-1, keepdims=True)                               # (ROWS, ROWS)
    o_attn = jnp.dot(p, v, preferred_element_type=jnp.float32)               # (ROWS, LP)

    # attn_drop ratio = 0.0 -> identity
    gate_c = jax.nn.sigmoid(jnp.mean(o_attn, axis=1, keepdims=True))         # (ROWS, 1)
    o_ref[0] = xg * gate_c


# ------------------------------ host-side packing ----------------------------
def _pack_params(params, blk):
    (w_loc, b_loc, w_s, b_s, w_m, b_m, w_l, b_l,
     gh_g, gh_b, gw_g, gw_b, gy_g, gy_b, wq, wk, wv) = params
    rows = blk * DIM

    def center(wt, k):
        s = (K_MAX - k) // 2
        return jnp.pad(wt, ((0, 0), (s, K_MAX - k - s)))

    w9 = jnp.concatenate([center(w_loc, KS[0]), center(w_s, KS[1]),
                          center(w_m, KS[2]), center(w_l, KS[3])], axis=0)   # (C, 9)
    conv_b = jnp.concatenate([b_loc, b_s, b_m, b_l], axis=0)                 # (C, 1)

    def tile_rows(a):
        return jnp.tile(a, (blk, 1))

    w9t = tile_rows(w9)                                                      # (rows, 9)
    cbt = tile_rows(conv_b)                                                  # (rows, 1)

    hmask = np.zeros((SPAN,), np.float32); hmask[:H] = 1.0
    wmask = np.zeros((SPAN,), np.float32); wmask[W_OFF:W_OFF + W] = 1.0

    taps = jnp.broadcast_to(jnp.transpose(w9t)[:, :, None], (K_MAX, rows, SPAN))
    bias_span = jnp.broadcast_to(cbt, (rows, SPAN))
    gamma_span = tile_rows(gh_g) * hmask[None, :] + tile_rows(gw_g) * wmask[None, :]
    beta_span = tile_rows(gh_b) * hmask[None, :] + tile_rows(gw_b) * wmask[None, :]
    wslab = jnp.concatenate([taps, bias_span[None], gamma_span[None], beta_span[None]],
                            axis=0)                                          # (12, rows, 36)

    # GN(1,C) affine folded into the depthwise 1x1 q/k/v weights, pre-broadcast to LP lanes
    pairs = ((gy_g * wq, gy_b * wq), (gy_g * wk, gy_b * wk), (gy_g * wv, gy_b * wv))
    colv = jnp.concatenate([jnp.broadcast_to(c, (DIM, LP)) for pr in pairs for c in pr],
                           axis=1)                                           # (C, 24)
    colv = tile_rows(colv)                                                   # (rows, 24)
    return wslab, colv


def _constant_mats(rows):
    l = np.arange(HW)
    hi, wi = l // W, l % W
    Eh = (hi[:, None] == np.arange(H)[None, :]).astype(np.float32)           # (196, 14)
    Ew = (wi[:, None] == np.arange(W)[None, :]).astype(np.float32)           # (196, 14)
    wp = W // WINDOW
    cell = (hi // WINDOW) * wp + (wi // WINDOW)
    pool = (cell[:, None] == np.arange(LP)[None, :]).astype(np.float32) / float(WINDOW * WINDOW)

    # conv-input matrix: x @ convm == [0(4) | mean_W(x) (14) | 0(8) | mean_H(x) (14) | 0(4)]
    convm = np.zeros((HWP, CONV_COLS), np.float32)
    convm[:HW, PAD:PAD + H] = Eh / float(W)
    convm[:HW, PAD + H + 2 * PAD:PAD + H + 2 * PAD + W] = Ew / float(H)

    poolm = np.zeros((HWP, LP), np.float32)
    poolm[:HW, :] = pool

    # merged gate-broadcast matrix: attn_span @ expm == [gate_h(256) | gate_w(256)]
    expm = np.zeros((SPAN, 2 * HWP), np.float32)
    expm[0:H, 0:HW] = Eh.T
    expm[W_OFF:W_OFF + W, HWP:HWP + HW] = Ew.T

    # lane indicators for GN(4) stats: [sum_h, sum_w, sumsq_h, sumsq_w]
    li = np.zeros((2 * SPAN, 4), np.float32)
    li[0:H, 0] = 1.0
    li[W_OFF:W_OFF + W, 1] = 1.0
    li[SPAN:SPAN + H, 2] = 1.0
    li[SPAN + W_OFF:SPAN + W_OFF + W, 3] = 1.0

    # expand group moments back onto span lanes (second-moment block at lane 128)
    ex4 = np.zeros((4, 256), np.float32)
    ex4[0, 0:H] = 1.0
    ex4[1, W_OFF:W_OFF + W] = 1.0
    ex4[2, 128:128 + H] = 1.0
    ex4[3, 128 + W_OFF:128 + W_OFF + W] = 1.0

    # per-sample block-diagonal constants (correct for any BLK)
    cidx = np.arange(rows) % DIM
    sidx = np.arange(rows) // DIM
    same_s = sidx[:, None] == sidx[None, :]
    gidx = cidx // GROUP_CHANS
    gn_blk = (same_s & (gidx[:, None] == gidx[None, :])).astype(np.float32) / float(GROUP_CHANS * H)
    hidx = cidx // HEAD_DIM
    head_mask = np.where(same_s & (hidx[:, None] == hidx[None, :]), 0.0, -1e9).astype(np.float32)
    samp_blk = same_s.astype(np.float32) / float(DIM * LP)
    sq = np.stack([gn_blk, head_mask, samp_blk], axis=0)                     # (3, rows, rows)

    return (jnp.asarray(convm), jnp.asarray(poolm), jnp.asarray(expm),
            jnp.asarray(li), jnp.asarray(ex4), jnp.asarray(sq))


def _pick_blk(b):
    """Largest divisor of b with blk*C <= 128 rows while keeping >=2 grid steps."""
    blk = 1
    for cand in range(1, b + 1):
        if b % cand == 0 and cand * DIM <= MAX_MXU_ROWS and (b // cand) >= min(2, b):
            blk = cand
    return blk


# -------------------------------- wrapper ------------------------------------
def scsa_forward(x, params):
    Bn, C, Hh, Ww = x.shape
    assert (C, Hh, Ww) == (DIM, H, W)
    blk = _pick_blk(Bn)
    nb = Bn // blk
    rows = blk * DIM

    x_flat = jnp.pad(x.reshape(Bn, C, HW), ((0, 0), (0, 0), (0, HWP - HW)))
    x_blk = x_flat.reshape(nb, rows, HWP)

    wslab, colv = _pack_params(params, blk)
    convm, poolm, expm, li, ex4, sq = _constant_mats(rows)

    def rep(a):
        zeros = (0,) * a.ndim
        return pl.BlockSpec(a.shape, lambda b, _z=zeros: _z)

    # rough advisory cost for the XLA scheduler
    flops = nb * 2 * rows * (HWP * CONV_COLS + 2 * SPAN * 4 + rows * 4 + 4 * 256
                             + SPAN * 2 * HWP + HWP * LP + rows * 2 + LP * rows + rows * LP)
    transc = nb * rows * (SPAN + rows + 2 * LP + 4)
    const_bytes = sum(int(np.prod(a.shape)) * 4
                      for a in (wslab, convm, poolm, expm, li, ex4, sq, colv))
    bytes_accessed = 2 * Bn * C * HWP * 4 + nb * const_bytes

    out = pl.pallas_call(
        scsa_kernel,
        out_shape=jax.ShapeDtypeStruct((nb, rows, HWP), jnp.float32),
        grid_spec=pltpu.PrefetchScalarGridSpec(
            num_scalar_prefetch=0,
            grid=(nb,),
            in_specs=[pl.BlockSpec((1, rows, HWP), lambda b: (b, 0, 0)),
                      rep(wslab), rep(convm), rep(poolm), rep(expm),
                      rep(li), rep(ex4), rep(sq), rep(colv)],
            out_specs=pl.BlockSpec((1, rows, HWP), lambda b: (b, 0, 0)),
        ),
        compiler_params=pltpu.CompilerParams(
            dimension_semantics=("parallel",)),
        cost_estimate=pl.CostEstimate(flops=int(flops),
                                      transcendentals=int(transc),
                                      bytes_accessed=int(bytes_accessed)),
    )(x_blk, wslab, convm, poolm, expm, li, ex4, sq, colv)

    return out.reshape(Bn, C, HWP)[:, :, :HW].reshape(Bn, C, H, W)


# -------------------------- pure-JAX reference --------------------------------
def reference(x, params):
    (w_loc, b_loc, w_s, b_s, w_m, b_m, w_l, b_l,
     gh_g, gh_b, gw_g, gw_b, gy_g, gy_b, wq, wk, wv) = params
    Bn, C, Hh, Ww = x.shape
    Cg = C // 4

    def dw1d(inp, w, b, k):
        pad = k // 2
        p = jnp.pad(inp, ((0, 0), (0, 0), (pad, pad)))
        L = inp.shape[2]
        out = sum(w[None, :, t:t + 1] * p[:, :, t:t + L] for t in range(k))
        return out + b[None, :, :]

    def branch(xv, gamma, beta):
        outs = []
        for gi, (w, b, k) in enumerate(((w_loc, b_loc, 3), (w_s, b_s, 5),
                                        (w_m, b_m, 7), (w_l, b_l, 9))):
            outs.append(dw1d(xv[:, gi * Cg:(gi + 1) * Cg, :], w, b, k))
        cat = jnp.concatenate(outs, axis=1)
        z = cat.reshape(Bn, 4, -1)
        mu = z.mean(-1, keepdims=True)
        var = ((z - mu) ** 2).mean(-1, keepdims=True)
        zn = ((z - mu) / jnp.sqrt(var + EPS)).reshape(cat.shape)
        zn = zn * gamma[None, :, :] + beta[None, :, :]
        return jax.nn.sigmoid(zn)

    x_h = x.mean(3)
    x_w = x.mean(2)
    xh_a = branch(x_h, gh_g, gh_b)[:, :, :, None]
    xw_a = branch(x_w, gw_g, gw_b)[:, :, None, :]
    xg = x * xh_a * xw_a

    Hp, Wp = Hh // WINDOW, Ww // WINDOW
    y = xg.reshape(Bn, C, Hp, WINDOW, Wp, WINDOW).mean(axis=(3, 5))
    z = y.reshape(Bn, 1, -1)
    mu = z.mean(-1, keepdims=True)
    var = ((z - mu) ** 2).mean(-1, keepdims=True)
    yn = ((z - mu) / jnp.sqrt(var + EPS)).reshape(y.shape)
    yn = yn * gy_g[None, :, :, None] + gy_b[None, :, :, None]

    q = yn * wq[None, :, :, None]
    k = yn * wk[None, :, :, None]
    v = yn * wv[None, :, :, None]
    L = Hp * Wp
    q = q.reshape(Bn, HEAD_NUM, HEAD_DIM, L)
    k = k.reshape(Bn, HEAD_NUM, HEAD_DIM, L)
    v = v.reshape(Bn, HEAD_NUM, HEAD_DIM, L)
    attn = jnp.einsum('bhdl,bhel->bhde', q, k) * (float(HEAD_DIM) ** -0.5)
    attn = jax.nn.softmax(attn, axis=-1)
    o = jnp.einsum('bhde,bhel->bhdl', attn, v)
    o = o.reshape(Bn, C, Hp, Wp).mean(axis=(2, 3), keepdims=True)
    return jax.nn.sigmoid(o) * xg


# --------------------------------- main ---------------------------------------
if __name__ == "__main__":
    key = jax.random.PRNGKey(0)
    ks = jax.random.split(key, 32)

    def mk(i, shape, scale=0.3):
        return scale * jax.random.normal(ks[i], shape, jnp.float32)

    params = (
        mk(1, (GROUP_CHANS, 3)), mk(2, (GROUP_CHANS, 1), 0.1),   # local_dwc  (k=3)
        mk(3, (GROUP_CHANS, 5)), mk(4, (GROUP_CHANS, 1), 0.1),   # global_dwc_s (k=5)
        mk(5, (GROUP_CHANS, 7)), mk(6, (GROUP_CHANS, 1), 0.1),   # global_dwc_m (k=7)
        mk(7, (GROUP_CHANS, 9)), mk(8, (GROUP_CHANS, 1), 0.1),   # global_dwc_l (k=9)
        1.0 + mk(9, (DIM, 1), 0.1), mk(10, (DIM, 1), 0.1),       # norm_h gamma/beta
        1.0 + mk(11, (DIM, 1), 0.1), mk(12, (DIM, 1), 0.1),      # norm_w gamma/beta
        1.0 + mk(13, (DIM, 1), 0.1), mk(14, (DIM, 1), 0.1),      # norm   gamma/beta
        mk(15, (DIM, 1), 0.5), mk(16, (DIM, 1), 0.5),            # q, k depthwise 1x1
        mk(17, (DIM, 1), 0.5),                                   # v depthwise 1x1
    )

    # B = 2: one sample per grid step (keeps both v7x TensorCores busy).
    x = jax.random.normal(ks[0], (2, DIM, H, W), jnp.float32)
    out = jax.block_until_ready(scsa_forward(x, params))
    ref = jax.block_until_ready(reference(x, params))
    np.testing.assert_allclose(np.asarray(out), np.asarray(ref), rtol=1e-3, atol=1e-3)

    # B = 8: exercises sublane sample-batching (4 samples = 64 rows per grid step).
    x8 = jax.random.normal(ks[20], (8, DIM, H, W), jnp.float32)
    out8 = jax.block_until_ready(scsa_forward(x8, params))
    ref8 = jax.block_until_ready(reference(x8, params))
    np.testing.assert_allclose(np.asarray(out8), np.asarray(ref8), rtol=1e-3, atol=1e-3)

    print("KERNEL_OK")
</pallas_src>

<mosaic_0001>
module attributes {stable_mosaic.version = 11 : i64} {
  func.func @scsa_kernel(%arg0: i32, %arg1: memref<1x16x256xf32, #tpu.memory_space<vmem>>, %arg2: memref<12x16x36xf32, #tpu.memory_space<vmem>>, %arg3: memref<256x44xf32, #tpu.memory_space<vmem>>, %arg4: memref<256x4xf32, #tpu.memory_space<vmem>>, %arg5: memref<36x512xf32, #tpu.memory_space<vmem>>, %arg6: memref<72x4xf32, #tpu.memory_space<vmem>>, %arg7: memref<4x256xf32, #tpu.memory_space<vmem>>, %arg8: memref<3x16x16xf32, #tpu.memory_space<vmem>>, %arg9: memref<16x24xf32, #tpu.memory_space<vmem>>, %arg10: memref<1x16x256xf32, #tpu.memory_space<vmem>>) attributes {dimension_semantics = [#tpu.dimension_semantics<parallel>], iteration_bounds = array<i64: 2>, scalar_prefetch = 0 : i64, scratch_operands = 0 : i64, tpu.core_type = #tpu.core_type<tc>, window_params = [{transform_indices = @transform_0, window_bounds = array<i64: 1, 16, 256>}, {pipeline_mode = #tpu.pipeline_mode<synchronous>, transform_indices = @transform_1, window_bounds = array<i64: 12, 16, 36>}, {pipeline_mode = #tpu.pipeline_mode<synchronous>, transform_indices = @transform_2, window_bounds = array<i64: 256, 44>}, {pipeline_mode = #tpu.pipeline_mode<synchronous>, transform_indices = @transform_3, window_bounds = array<i64: 256, 4>}, {pipeline_mode = #tpu.pipeline_mode<synchronous>, transform_indices = @transform_4, window_bounds = array<i64: 36, 512>}, {pipeline_mode = #tpu.pipeline_mode<synchronous>, transform_indices = @transform_5, window_bounds = array<i64: 72, 4>}, {pipeline_mode = #tpu.pipeline_mode<synchronous>, transform_indices = @transform_6, window_bounds = array<i64: 4, 256>}, {pipeline_mode = #tpu.pipeline_mode<synchronous>, transform_indices = @transform_7, window_bounds = array<i64: 3, 16, 16>}, {pipeline_mode = #tpu.pipeline_mode<synchronous>, transform_indices = @transform_8, window_bounds = array<i64: 16, 24>}, {transform_indices = @transform_9, window_bounds = array<i64: 1, 16, 256>}]} {
    %c0 = arith.constant 0 : index
    %c0_0 = arith.constant 0 : index
    %c0_1 = arith.constant 0 : index
    %0 = vector.load %arg1[%c0, %c0_0, %c0_1] : memref<1x16x256xf32, #tpu.memory_space<vmem>>, vector<1x16x256xf32>
    %1 = vector.shape_cast %0 : vector<1x16x256xf32> to vector<16x256xf32>
    %c0_2 = arith.constant 0 : index
    %c0_3 = arith.constant 0 : index
    %c0_4 = arith.constant 0 : index
    %2 = vector.load %arg8[%c0_2, %c0_3, %c0_4] : memref<3x16x16xf32, #tpu.memory_space<vmem>>, vector<1x16x16xf32>
    %3 = vector.shape_cast %2 : vector<1x16x16xf32> to vector<16x16xf32>
    %c1 = arith.constant 1 : index
    %c0_5 = arith.constant 0 : index
    %c0_6 = arith.constant 0 : index
    %4 = vector.load %arg8[%c1, %c0_5, %c0_6] : memref<3x16x16xf32, #tpu.memory_space<vmem>>, vector<1x16x16xf32>
    %5 = vector.shape_cast %4 : vector<1x16x16xf32> to vector<16x16xf32>
    %c2 = arith.constant 2 : index
    %c0_7 = arith.constant 0 : index
    %c0_8 = arith.constant 0 : index
    %6 = vector.load %arg8[%c2, %c0_7, %c0_8] : memref<3x16x16xf32, #tpu.memory_space<vmem>>, vector<1x16x16xf32>
    %7 = vector.shape_cast %6 : vector<1x16x16xf32> to vector<16x16xf32>
    %c0_9 = arith.constant 0 : index
    %c0_10 = arith.constant 0 : index
    %8 = vector.load %arg9[%c0_9, %c0_10] : memref<16x24xf32, #tpu.memory_space<vmem>>, vector<16x24xf32>
    %c0_11 = arith.constant 0 : index
    %c0_12 = arith.constant 0 : index
    %9 = vector.load %arg3[%c0_11, %c0_12] : memref<256x44xf32, #tpu.memory_space<vmem>>, vector<256x44xf32>
    %cst = arith.constant dense<0.000000e+00> : vector<16x44xf32>
    %10 = tpu.matmul %1, %9, %cst {dimension_numbers = #tpu.dot_dimension_numbers<[1], [0], [0], [1], [0, 0, 1, 1], [], []>} : vector<16x256xf32>, vector<256x44xf32>, vector<16x44xf32> -> vector<16x44xf32>
    %c9 = arith.constant 9 : index
    %c0_13 = arith.constant 0 : index
    %c0_14 = arith.constant 0 : index
    %11 = vector.load %arg2[%c9, %c0_13, %c0_14] : memref<12x16x36xf32, #tpu.memory_space<vmem>>, vector<1x16x36xf32>
    %12 = vector.shape_cast %11 : vector<1x16x36xf32> to vector<16x36xf32>
    %c0_15 = arith.constant 0 : index
    %c0_16 = arith.constant 0 : index
    %c0_17 = arith.constant 0 : index
    %13 = vector.load %arg2[%c0_15, %c0_16, %c0_17] : memref<12x16x36xf32, #tpu.memory_space<vmem>>, vector<1x16x36xf32>
    %14 = vector.shape_cast %13 : vector<1x16x36xf32> to vector<16x36xf32>
    %15 = vector.extract_strided_slice %10 {offsets = [0, 0], sizes = [16, 36], strides = [1, 1]} : vector<16x44xf32> to vector<16x36xf32>
    %16 = arith.mulf %14, %15 : vector<16x36xf32>
    %17 = arith.addf %12, %16 : vector<16x36xf32>
    %c1_18 = arith.constant 1 : index
    %c0_19 = arith.constant 0 : index
    %c0_20 = arith.constant 0 : index
    %18 = vector.load %arg2[%c1_18, %c0_19, %c0_20] : memref<12x16x36xf32, #tpu.memory_space<vmem>>, vector<1x16x36xf32>
    %19 = vector.shape_cast %18 : vector<1x16x36xf32> to vector<16x36xf32>
    %20 = vector.extract_strided_slice %10 {offsets = [0, 1], sizes = [16, 36], strides = [1, 1]} : vector<16x44xf32> to vector<16x36xf32>
    %21 = arith.mulf %19, %20 : vector<16x36xf32>
    %22 = arith.addf %17, %21 : vector<16x36xf32>
    %c2_21 = arith.constant 2 : index
    %c0_22 = arith.constant 0 : index
    %c0_23 = arith.constant 0 : index
    %23 = vector.load %arg2[%c2_21, %c0_22, %c0_23] : memref<12x16x36xf32, #tpu.memory_space<vmem>>, vector<1x16x36xf32>
    %24 = vector.shape_cast %23 : vector<1x16x36xf32> to vector<16x36xf32>
    %25 = vector.extract_strided_slice %10 {offsets = [0, 2], sizes = [16, 36], strides = [1, 1]} : vector<16x44xf32> to vector<16x36xf32>
    %26 = arith.mulf %24, %25 : vector<16x36xf32>
    %27 = arith.addf %22, %26 : vector<16x36xf32>
    %c3 = arith.constant 3 : index
    %c0_24 = arith.constant 0 : index
    %c0_25 = arith.constant 0 : index
    %28 = vector.load %arg2[%c3, %c0_24, %c0_25] : memref<12x16x36xf32, #tpu.memory_space<vmem>>, vector<1x16x36xf32>
    %29 = vector.shape_cast %28 : vector<1x16x36xf32> to vector<16x36xf32>
    %30 = vector.extract_strided_slice %10 {offsets = [0, 3], sizes = [16, 36], strides = [1, 1]} : vector<16x44xf32> to vector<16x36xf32>
    %31 = arith.mulf %29, %30 : vector<16x36xf32>
    %32 = arith.addf %27, %31 : vector<16x36xf32>
    %c4 = arith.constant 4 : index
    %c0_26 = arith.constant 0 : index
    %c0_27 = arith.constant 0 : index
    %33 = vector.load %arg2[%c4, %c0_26, %c0_27] : memref<12x16x36xf32, #tpu.memory_space<vmem>>, vector<1x16x36xf32>
    %34 = vector.shape_cast %33 : vector<1x16x36xf32> to vector<16x36xf32>
    %35 = vector.extract_strided_slice %10 {offsets = [0, 4], sizes = [16, 36], strides = [1, 1]} : vector<16x44xf32> to vector<16x36xf32>
    %36 = arith.mulf %34, %35 : vector<16x36xf32>
    %37 = arith.addf %32, %36 : vector<16x36xf32>
    %c5 = arith.constant 5 : index
    %c0_28 = arith.constant 0 : index
    %c0_29 = arith.constant 0 : index
    %38 = vector.load %arg2[%c5, %c0_28, %c0_29] : memref<12x16x36xf32, #tpu.memory_space<vmem>>, vector<1x16x36xf32>
    %39 = vector.shape_cast %38 : vector<1x16x36xf32> to vector<16x36xf32>
    %40 = vector.extract_strided_slice %10 {offsets = [0, 5], sizes = [16, 36], strides = [1, 1]} : vector<16x44xf32> to vector<16x36xf32>
    %41 = arith.mulf %39, %40 : vector<16x36xf32>
    %42 = arith.addf %37, %41 : vector<16x36xf32>
    %c6 = arith.constant 6 : index
    %c0_30 = arith.constant 0 : index
    %c0_31 = arith.constant 0 : index
    %43 = vector.load %arg2[%c6, %c0_30, %c0_31] : memref<12x16x36xf32, #tpu.memory_space<vmem>>, vector<1x16x36xf32>
    %44 = vector.shape_cast %43 : vector<1x16x36xf32> to vector<16x36xf32>
    %45 = vector.extract_strided_slice %10 {offsets = [0, 6], sizes = [16, 36], strides = [1, 1]} : vector<16x44xf32> to vector<16x36xf32>
    %46 = arith.mulf %44, %45 : vector<16x36xf32>
    %47 = arith.addf %42, %46 : vector<16x36xf32>
    %c7 = arith.constant 7 : index
    %c0_32 = arith.constant 0 : index
    %c0_33 = arith.constant 0 : index
    %48 = vector.load %arg2[%c7, %c0_32, %c0_33] : memref<12x16x36xf32, #tpu.memory_space<vmem>>, vector<1x16x36xf32>
    %49 = vector.shape_cast %48 : vector<1x16x36xf32> to vector<16x36xf32>
    %50 = vector.extract_strided_slice %10 {offsets = [0, 7], sizes = [16, 36], strides = [1, 1]} : vector<16x44xf32> to vector<16x36xf32>
    %51 = arith.mulf %49, %50 : vector<16x36xf32>
    %52 = arith.addf %47, %51 : vector<16x36xf32>
    %c8 = arith.constant 8 : index
    %c0_34 = arith.constant 0 : index
    %c0_35 = arith.constant 0 : index
    %53 = vector.load %arg2[%c8, %c0_34, %c0_35] : memref<12x16x36xf32, #tpu.memory_space<vmem>>, vector<1x16x36xf32>
    %54 = vector.shape_cast %53 : vector<1x16x36xf32> to vector<16x36xf32>
    %55 = vector.extract_strided_slice %10 {offsets = [0, 8], sizes = [16, 36], strides = [1, 1]} : vector<16x44xf32> to vector<16x36xf32>
    %56 = arith.mulf %54, %55 : vector<16x36xf32>
    %57 = arith.addf %52, %56 : vector<16x36xf32>
    %58 = arith.mulf %57, %57 : vector<16x36xf32>
    %59 = tpu.concatenate %57, %58 in 1 : vector<16x36xf32>, vector<16x36xf32> -> vector<16x72xf32>
    %c0_36 = arith.constant 0 : index
    %c0_37 = arith.constant 0 : index
    %60 = vector.load %arg6[%c0_36, %c0_37] : memref<72x4xf32, #tpu.memory_space<vmem>>, vector<72x4xf32>
    %cst_38 = arith.constant dense<0.000000e+00> : vector<16x4xf32>
    %61 = tpu.matmul %59, %60, %cst_38 {dimension_numbers = #tpu.dot_dimension_numbers<[1], [0], [0], [1], [0, 0, 1, 1], [], []>} : vector<16x72xf32>, vector<72x4xf32>, vector<16x4xf32> -> vector<16x4xf32>
    %cst_39 = arith.constant dense<0.000000e+00> : vector<16x4xf32>
    %62 = tpu.matmul %3, %61, %cst_39 {dimension_numbers = #tpu.dot_dimension_numbers<[1], [0], [0], [1], [0, 0, 1, 1], [], []>} : vector<16x16xf32>, vector<16x4xf32>, vector<16x4xf32> -> vector<16x4xf32>
    %c0_40 = arith.constant 0 : index
    %c0_41 = arith.constant 0 : index
    %63 = vector.load %arg7[%c0_40, %c0_41] : memref<4x256xf32, #tpu.memory_space<vmem>>, vector<4x256xf32>
    %cst_42 = arith.constant dense<0.000000e+00> : vector<16x256xf32>
    %64 = tpu.matmul %62, %63, %cst_42 {dimension_numbers = #tpu.dot_dimension_numbers<[1], [0], [0], [1], [0, 0, 1, 1], [], []>} : vector<16x4xf32>, vector<4x256xf32>, vector<16x256xf32> -> vector<16x256xf32>
    %65 = vector.extract_strided_slice %64 {offsets = [0, 0], sizes = [16, 36], strides = [1, 1]} : vector<16x256xf32> to vector<16x36xf32>
    %66 = vector.extract_strided_slice %64 {offsets = [0, 128], sizes = [16, 36], strides = [1, 1]} : vector<16x256xf32> to vector<16x36xf32>
    %67 = arith.mulf %65, %65 : vector<16x36xf32>
    %68 = arith.subf %66, %67 : vector<16x36xf32>
    %cst_43 = arith.constant 0.000000e+00 : f32
    %69 = vector.broadcast %cst_43 : f32 to vector<16x36xf32>
    %70 = arith.maximumf %68, %69 : vector<16x36xf32>
    %cst_44 = arith.constant 9.99999974E-6 : f32
    %71 = vector.broadcast %cst_44 : f32 to vector<16x36xf32>
    %72 = arith.addf %70, %71 : vector<16x36xf32>
    %73 = math.rsqrt %72 : vector<16x36xf32>
    %74 = arith.subf %57, %65 : vector<16x36xf32>
    %75 = arith.mulf %74, %73 : vector<16x36xf32>
    %c10 = arith.constant 10 : index
    %c0_45 = arith.constant 0 : index
    %c0_46 = arith.constant 0 : index
    %76 = vector.load %arg2[%c10, %c0_45, %c0_46] : memref<12x16x36xf32, #tpu.memory_space<vmem>>, vector<1x16x36xf32>
    %77 = vector.shape_cast %76 : vector<1x16x36xf32> to vector<16x36xf32>
    %78 = arith.mulf %75, %77 : vector<16x36xf32>
    %c11 = arith.constant 11 : index
    %c0_47 = arith.constant 0 : index
    %c0_48 = arith.constant 0 : index
    %79 = vector.load %arg2[%c11, %c0_47, %c0_48] : memref<12x16x36xf32, #tpu.memory_space<vmem>>, vector<1x16x36xf32>
    %80 = vector.shape_cast %79 : vector<1x16x36xf32> to vector<16x36xf32>
    %81 = arith.addf %78, %80 : vector<16x36xf32>
    %82 = arith.negf %81 : vector<16x36xf32>
    %83 = math.exp %82 : vector<16x36xf32>
    %cst_49 = arith.constant 1.000000e+00 : f32
    %84 = vector.broadcast %cst_49 : f32 to vector<16x36xf32>
    %85 = arith.addf %84, %83 : vector<16x36xf32>
    %86 = arith.divf %84, %85 : vector<16x36xf32>
    %c0_50 = arith.constant 0 : index
    %c0_51 = arith.constant 0 : index
    %87 = vector.load %arg5[%c0_50, %c0_51] : memref<36x512xf32, #tpu.memory_space<vmem>>, vector<36x512xf32>
    %cst_52 = arith.constant dense<0.000000e+00> : vector<16x512xf32>
    %88 = tpu.matmul %86, %87, %cst_52 {dimension_numbers = #tpu.dot_dimension_numbers<[1], [0], [0], [1], [0, 0, 1, 1], [], []>} : vector<16x36xf32>, vector<36x512xf32>, vector<16x512xf32> -> vector<16x512xf32>
    %89 = vector.extract_strided_slice %88 {offsets = [0, 0], sizes = [16, 256], strides = [1, 1]} : vector<16x512xf32> to vector<16x256xf32>
    %90 = arith.mulf %1, %89 : vector<16x256xf32>
    %91 = vector.extract_strided_slice %88 {offsets = [0, 256], sizes = [16, 256], strides = [1, 1]} : vector<16x512xf32> to vector<16x256xf32>
    %92 = arith.mulf %90, %91 : vector<16x256xf32>
    %c0_53 = arith.constant 0 : index
    %c0_54 = arith.constant 0 : index
    %93 = vector.load %arg4[%c0_53, %c0_54] : memref<256x4xf32, #tpu.memory_space<vmem>>, vector<256x4xf32>
    %cst_55 = arith.constant dense<0.000000e+00> : vector<16x4xf32>
    %94 = tpu.matmul %92, %93, %cst_55 {dimension_numbers = #tpu.dot_dimension_numbers<[1], [0], [0], [1], [0, 0, 1, 1], [], []>} : vector<16x256xf32>, vector<256x4xf32>, vector<16x4xf32> -> vector<16x4xf32>
    %cst_56 = arith.constant dense<0.000000e+00> : vector<16xf32>
    %95 = vector.multi_reduction <add>, %94, %cst_56 [1] : vector<16x4xf32> to vector<16xf32>
    %96 = vector.shape_cast %95 : vector<16xf32> to vector<16x1xf32>
    %97 = arith.mulf %94, %94 : vector<16x4xf32>
    %cst_57 = arith.constant dense<0.000000e+00> : vector<16xf32>
    %98 = vector.multi_reduction <add>, %97, %cst_57 [1] : vector<16x4xf32> to vector<16xf32>
    %99 = vector.shape_cast %98 : vector<16xf32> to vector<16x1xf32>
    %100 = tpu.concatenate %96, %99 in 1 : vector<16x1xf32>, vector<16x1xf32> -> vector<16x2xf32>
    %cst_58 = arith.constant dense<0.000000e+00> : vector<16x2xf32>
    %101 = tpu.matmul %7, %100, %cst_58 {dimension_numbers = #tpu.dot_dimension_numbers<[1], [0], [0], [1], [0, 0, 1, 1], [], []>} : vector<16x16xf32>, vector<16x2xf32>, vector<16x2xf32> -> vector<16x2xf32>
    %102 = vector.extract_strided_slice %101 {offsets = [0, 0], sizes = [16, 1], strides = [1, 1]} : vector<16x2xf32> to vector<16x1xf32>
    %103 = vector.extract_strided_slice %101 {offsets = [0, 1], sizes = [16, 1], strides = [1, 1]} : vector<16x2xf32> to vector<16x1xf32>
    %104 = arith.mulf %102, %102 : vector<16x1xf32>
    %105 = arith.subf %103, %104 : vector<16x1xf32>
    %cst_59 = arith.constant 0.000000e+00 : f32
    %106 = vector.broadcast %cst_59 : f32 to vector<16x1xf32>
    %107 = arith.maximumf %105, %106 : vector<16x1xf32>
    %108 = vector.broadcast %102 : vector<16x1xf32> to vector<16x4xf32>
    %109 = arith.subf %94, %108 : vector<16x4xf32>
    %cst_60 = arith.constant 9.99999974E-6 : f32
    %110 = vector.broadcast %cst_60 : f32 to vector<16x1xf32>
    %111 = arith.addf %107, %110 : vector<16x1xf32>
    %112 = math.rsqrt %111 : vector<16x1xf32>
    %113 = vector.broadcast %112 : vector<16x1xf32> to vector<16x4xf32>
    %114 = arith.mulf %109, %113 : vector<16x4xf32>
    %115 = vector.extract_strided_slice %8 {offsets = [0, 0], sizes = [16, 4], strides = [1, 1]} : vector<16x24xf32> to vector<16x4xf32>
    %116 = arith.mulf %114, %115 : vector<16x4xf32>
    %117 = vector.extract_strided_slice %8 {offsets = [0, 4], sizes = [16, 4], strides = [1, 1]} : vector<16x24xf32> to vector<16x4xf32>
    %118 = arith.addf %116, %117 : vector<16x4xf32>
    %119 = vector.extract_strided_slice %8 {offsets = [0, 8], sizes = [16, 4], strides = [1, 1]} : vector<16x24xf32> to vector<16x4xf32>
    %120 = arith.mulf %114, %119 : vector<16x4xf32>
    %121 = vector.extract_strided_slice %8 {offsets = [0, 12], sizes = [16, 4], strides = [1, 1]} : vector<16x24xf32> to vector<16x4xf32>
    %122 = arith.addf %120, %121 : vector<16x4xf32>
    %123 = vector.extract_strided_slice %8 {offsets = [0, 16], sizes = [16, 4], strides = [1, 1]} : vector<16x24xf32> to vector<16x4xf32>
    %124 = arith.mulf %114, %123 : vector<16x4xf32>
    %125 = vector.extract_strided_slice %8 {offsets = [0, 20], sizes = [16, 4], strides = [1, 1]} : vector<16x24xf32> to vector<16x4xf32>
    %126 = arith.addf %124, %125 : vector<16x4xf32>
    "tpu.trace_start"() <{level = 10 : i32, message = "dl,el->de"}> : () -> ()
    %cst_61 = arith.constant dense<0.000000e+00> : vector<16x16xf32>
    %127 = tpu.matmul %118, %122, %cst_61 {dimension_numbers = #tpu.dot_dimension_numbers<[1], [1], [0], [0], [0, 0, 1, 0], [], []>} : vector<16x4xf32>, vector<16x4xf32>, vector<16x16xf32> -> vector<16x16xf32>
    "tpu.trace_stop"() : () -> ()
    %cst_62 = arith.constant 5.000000e-01 : f32
    %128 = vector.broadcast %cst_62 : f32 to vector<16x16xf32>
    %129 = arith.mulf %127, %128 : vector<16x16xf32>
    %130 = arith.addf %129, %5 : vector<16x16xf32>
    %cst_63 = arith.constant dense<0xFF800000> : vector<16xf32>
    %131 = vector.multi_reduction <maximumf>, %130, %cst_63 [1] : vector<16x16xf32> to vector<16xf32>
    %132 = vector.shape_cast %131 : vector<16xf32> to vector<16x1xf32>
    %133 = vector.broadcast %132 : vector<16x1xf32> to vector<16x16xf32>
    %134 = arith.subf %130, %133 : vector<16x16xf32>
    %135 = math.exp %134 : vector<16x16xf32>
    %cst_64 = arith.constant dense<0.000000e+00> : vector<16xf32>
    %136 = vector.multi_reduction <add>, %135, %cst_64 [1] : vector<16x16xf32> to vector<16xf32>
    %137 = vector.shape_cast %136 : vector<16xf32> to vector<16x1xf32>
    %138 = vector.broadcast %137 : vector<16x1xf32> to vector<16x16xf32>
    %139 = arith.divf %135, %138 : vector<16x16xf32>
    %cst_65 = arith.constant dense<0.000000e+00> : vector<16x4xf32>
    %140 = tpu.matmul %139, %126, %cst_65 {dimension_numbers = #tpu.dot_dimension_numbers<[1], [0], [0], [1], [0, 0, 1, 1], [], []>} : vector<16x16xf32>, vector<16x4xf32>, vector<16x4xf32> -> vector<16x4xf32>
    %cst_66 = arith.constant dense<0.000000e+00> : vector<16xf32>
    %141 = vector.multi_reduction <add>, %140, %cst_66 [1] : vector<16x4xf32> to vector<16xf32>
    %142 = vector.shape_cast %141 : vector<16xf32> to vector<16x1xf32>
    %cst_67 = arith.constant 4.000000e+00 : f32
    %143 = vector.broadcast %cst_67 : f32 to vector<16x1xf32>
    %144 = arith.divf %142, %143 : vector<16x1xf32>
    %145 = arith.negf %144 : vector<16x1xf32>
    %146 = math.exp %145 : vector<16x1xf32>
    %cst_68 = arith.constant 1.000000e+00 : f32
    %147 = vector.broadcast %cst_68 : f32 to vector<16x1xf32>
    %148 = arith.addf %147, %146 : vector<16x1xf32>
    %149 = arith.divf %147, %148 : vector<16x1xf32>
    %150 = vector.broadcast %149 : vector<16x1xf32> to vector<16x256xf32>
    %151 = arith.mulf %92, %150 : vector<16x256xf32>
    %c0_69 = arith.constant 0 : index
    %c0_70 = arith.constant 0 : index
    %c0_71 = arith.constant 0 : index
    %152 = vector.load %arg10[%c0_69, %c0_70, %c0_71] : memref<1x16x256xf32, #tpu.memory_space<vmem>>, vector<1x16x256xf32>
    %153 = vector.shape_cast %152 : vector<1x16x256xf32> to vector<16x256xf32>
    %154 = vector.shape_cast %151 : vector<16x256xf32> to vector<1x16x256xf32>
    tpu.vector_store %arg10[%c0_69, %c0_70, %c0_71], %154 {strides = array<i32>} : memref<1x16x256xf32, #tpu.memory_space<vmem>>, vector<1x16x256xf32>,
    return
  }
  func.func @transform_0(%arg0: i32) -> (i32, i32, i32) {
    %c0_i32 = arith.constant 0 : i32
    %c0_i32_0 = arith.constant 0 : i32
    %c0_i32_1 = arith.constant 0 : i32
    return %arg0, %c0_i32, %c0_i32_0 : i32, i32, i32
  }
  func.func @transform_1(%arg0: i32) -> (i32, i32, i32) {
    %c0_i32 = arith.constant 0 : i32
    %c0_i32_0 = arith.constant 0 : i32
    %c0_i32_1 = arith.constant 0 : i32
    %c0_i32_2 = arith.constant 0 : i32
    return %c0_i32, %c0_i32_0, %c0_i32_1 : i32, i32, i32
  }
  func.func @transform_2(%arg0: i32) -> (i32, i32) {
    %c0_i32 = arith.constant 0 : i32
    %c0_i32_0 = arith.constant 0 : i32
    %c0_i32_1 = arith.constant 0 : i32
    return %c0_i32, %c0_i32_0 : i32, i32
  }
  func.func @transform_3(%arg0: i32) -> (i32, i32) {
    %c0_i32 = arith.constant 0 : i32
    %c0_i32_0 = arith.constant 0 : i32
    %c0_i32_1 = arith.constant 0 : i32
    return %c0_i32, %c0_i32_0 : i32, i32
  }
  func.func @transform_4(%arg0: i32) -> (i32, i32) {
    %c0_i32 = arith.constant 0 : i32
    %c0_i32_0 = arith.constant 0 : i32
    %c0_i32_1 = arith.constant 0 : i32
    return %c0_i32, %c0_i32_0 : i32, i32
  }
  func.func @transform_5(%arg0: i32) -> (i32, i32) {
    %c0_i32 = arith.constant 0 : i32
    %c0_i32_0 = arith.constant 0 : i32
    %c0_i32_1 = arith.constant 0 : i32
    return %c0_i32, %c0_i32_0 : i32, i32
  }
  func.func @transform_6(%arg0: i32) -> (i32, i32) {
    %c0_i32 = arith.constant 0 : i32
    %c0_i32_0 = arith.constant 0 : i32
    %c0_i32_1 = arith.constant 0 : i32
    return %c0_i32, %c0_i32_0 : i32, i32
  }
  func.func @transform_7(%arg0: i32) -> (i32, i32, i32) {
    %c0_i32 = arith.constant 0 : i32
    %c0_i32_0 = arith.constant 0 : i32
    %c0_i32_1 = arith.constant 0 : i32
    %c0_i32_2 = arith.constant 0 : i32
    return %c0_i32, %c0_i32_0, %c0_i32_1 : i32, i32, i32
  }
  func.func @transform_8(%arg0: i32) -> (i32, i32) {
    %c0_i32 = arith.constant 0 : i32
    %c0_i32_0 = arith.constant 0 : i32
    %c0_i32_1 = arith.constant 0 : i32
    return %c0_i32, %c0_i32_0 : i32, i32
  }
  func.func @transform_9(%arg0: i32) -> (i32, i32, i32) {
    %c0_i32 = arith.constant 0 : i32
    %c0_i32_0 = arith.constant 0 : i32
    %c0_i32_1 = arith.constant 0 : i32
    return %arg0, %c0_i32, %c0_i32_0 : i32, i32, i32
  }
}

</mosaic_0001>

<bundles_post_ra>
// kernel: tpu_custom_call.1
= control target key start
LH: loop header
LB: loop body
LE: loop exit
PB: predicated region body
PF: predicated region fallthrough
CT: control target
= control target key end

     0   :  { %14 = vsyncpa [#allocation3], 0  ;;  %s2838_s0 = inlined_call_operand.vmem [shape: f32[2,16,256], index: 0, kind: input, shape index: {}]   ;;  %s2839_s1 = inlined_call_operand.vmem [shape: f32[12,16,36], index: 1, kind: input, shape index: {}]   ;;  %s2840_s2 = inlined_call_operand.vmem [shape: f32[256,44], index: 2, kind: input, shape index: {}]   ;;  %s2841_s3 = inlined_call_operand.vmem [shape: f32[256,4], index: 3, kind: input, shape index: {}]   ;;  %s2842_s4 = inlined_call_operand.vmem [shape: f32[36,512], index: 4, kind: input, shape index: {}]   ;;  %s2843_s5 = inlined_call_operand.vmem [shape: f32[72,4], index: 5, kind: input, shape index: {}]   ;;  %s2844_s6 = inlined_call_operand.vmem [shape: f32[4,256], index: 6, kind: input, shape index: {}]   ;;  %s2845_s7 = inlined_call_operand.vmem [shape: f32[3,16,16], index: 7, kind: input, shape index: {}]   ;;  %s2846_s8 = inlined_call_operand.vmem [shape: f32[16,24], index: 8, kind: input, shape index: {}]   ;;  %s2847_s9 = inlined_call_operand.hbm [shape: f32[2,16,256], index: 9, kind: output, shape index: {}]  }
   0x1   :  { %16 = vsyncpa [#allocation3 + $0x1], 0  ;;  %s2231_s30 = smov 0   ;;  %s2233_s10 = smov 0  }
   0x2   :  { %s2235_s11 = smov 0   ;;  %s2237_s12 = smov 0  }
   0x3 LB: > { %s2252_s13 = sadd.s32 4294967295, %s2160_s12   ;;  %s1671_s14 = sadd.s32 4294967294, %s2160_s12   ;;  %s2160_s12 = sphi %s2237_s12, %s2856_s12   ;;  %s2156_s11 = sphi %s2235_s11, %s2855_s11   ;;  %s2152_s10 = sphi %s2233_s10, %s2854_s10   ;;  %s2148_s30 = sphi %s2231_s30, %s2853_s30  }
   0x4   : > { %s2256_s15 = sadd.s32 1, %s2160_s12   ;;  %s223_s16 = sadd.s32 1, %s2156_s11 }
   0x5   : > { %s220_s17 = ssub.s32 %s2160_s12, %s2256_s15  ;;  %p233_p0 = scmp.ne.s32.totalorder %s2156_s11, %s2152_s10 }
   0x6   : > { %p221_p1 = scmp.eq.s32.totalorder %s220_s17, 0  ;;  %p234_p2 = scmp.eq.s32.totalorder %s2252_s13, 1 }
   0x7   : > { %p239_p3 = scmp.ne.s32.totalorder %s2152_s10, %s2148_s30  ;;  %p240_p4 = scmp.eq.s32.totalorder %s1671_s14, 1 }
   0x8   : > { %s2267_s18 = scalar_select %p221_p1, %s2156_s11, %s223_s16  }
   0x9   : > { %p2269_p5 = por %p234_p2, %p233_p0  ;;  %p2273_p6 = por %p240_p4, %p239_p3 }
   0xa   : > { %p1674_p7 = scmp.ge.s32.totalorder %s2160_s12, 1  ;;  %p290_p8 = scmp.lt.s32.totalorder %s2160_s12, 3 }
   0xc   : > { %p291_p9 = pnand %p1674_p7, %p290_p8 }
   0xd   : > { %v361_v0 = vld [vmem:[%s2840_s2 + $0x80] sm:$0xff] (!%p291_p9)  ;;  %v362_v1 = vld [vmem:[%s2840_s2 + $0x88] sm:$0xff] (!%p291_p9)  ;;  %p326_p10 = scmp.lt.s32.totalorder (!%p291_p9), %s2252_s13, 1  ;;  %v363_v5 = vld [vmem:[%s2840_s2 + $0x90] sm:$0xff] (!%p291_p9)  ;;  %s2162_s22 = smov (!%p291_p9), 126   ;;  %vm577_vm0 = vcmask (!%p291_p9), 293888  }
   0xe   : > { %294 = sbr.rel (%p291_p9) target bundleno = 3243 (0xcab), region = 56  ;;  %v345_v2 = vld [vmem:[%s2840_s2] sm:$0xff] (!%p291_p9)  ;;  %v1891_v3 = vpack.c.bf16 (!%p291_p9), %v362_v1, %v361_v0  ;;  %v346_v4 = vld [vmem:[%s2840_s2 + $0x8] sm:$0xff] (!%p291_p9)  ;;  %v364_v6 = vld [vmem:[%s2840_s2 + $0x98] sm:$0xff] (!%p291_p9)  ;;  %s2163_s23 = smov (!%p291_p9), 127   ;;  %vm589_vm1 = vcmask (!%p291_p9), 588800  }
   0xf   : > { %v1893_v7 = vpack.c.bf16 (!%p291_p9), %v346_v4, %v345_v2  ;;  %v1895_v8 = vpack.c.bf16 (!%p291_p9), %v364_v6, %v363_v5  ;;  %v347_v9 = vld [vmem:[%s2840_s2 + $0x10] sm:$0xff] (!%p291_p9)  ;;  %v348_v10 = vld [vmem:[%s2840_s2 + $0x18] sm:$0xff] (!%p291_p9)  ;;  %v365_v11 = vld [vmem:[%s2840_s2 + $0xa0] sm:$0xff] (!%p291_p9)  ;;  %s2164_s24 = smov (!%p291_p9), 125   ;;  %s2848_s25 = smov (!%p291_p9), 124   ;;  %vm671_vm2 = vcmask (!%p291_p9), 130048  }
  0x10   : > { %1892 = vmatprep.subr.bf16.mxu0 (!%p291_p9), %v1891_v3  ;;  %v366_v12 = vld [vmem:[%s2840_s2 + $0xa8] sm:$0xff] (!%p291_p9)  ;;  %v1897_v13 = vpack.c.bf16 (!%p291_p9), %v348_v10, %v347_v9  ;;  %v349_v15 = vld [vmem:[%s2840_s2 + $0x20] sm:$0xff] (!%p291_p9)  ;;  %v367_v17 = vld [vmem:[%s2840_s2 + $0xb0] sm:$0xff] (!%p291_p9)  ;;  %vm763_vm3 = vcmask (!%p291_p9), 1043456   ;;  %vm756_vm4 = vcmask (!%p291_p9), 31744   ;;  %vm1202_vm5 = vcmask (!%p291_p9), 7168  }
  0x11   : > { %1894 = vmatpush3.bf16.msra.mxu0 (!%p291_p9), %v1893_v7  ;;  %v1899_v14 = vpack.c.bf16 (!%p291_p9), %v366_v12, %v365_v11  ;;  %v350_v16 = vld [vmem:[%s2840_s2 + $0x28] sm:$0xff] (!%p291_p9)  ;;  %v368_v18 = vld [vmem:[%s2840_s2 + $0xb8] sm:$0xff] (!%p291_p9)  ;;  %v351_v21 = vld [vmem:[%s2840_s2 + $0x30] sm:$0xff] (!%p291_p9)  ;;  %s2174_s28 = smov (!%p291_p9), 1   ;;  %s2176_s26 = smov (!%p291_p9), 112  }
  0x12   : > { %1896 = vmatprep.subr.bf16.mxu0 (!%p291_p9), %v1895_v8  ;;  %v1901_v19 = vpack.c.bf16 (!%p291_p9), %v350_v16, %v349_v15  ;;  %v1903_v20 = vpack.c.bf16 (!%p291_p9), %v368_v18, %v367_v17  ;;  %v352_v22 = vld [vmem:[%s2840_s2 + $0x38] sm:$0xff] (!%p291_p9)  ;;  %v369_v23 = vld [vmem:[%s2840_s2 + $0xc0] sm:$0xff] (!%p291_p9)  ;;  %v370_v24 = vld [vmem:[%s2840_s2 + $0xc8] sm:$0xff] (!%p291_p9)  ;;  %s1738_s17 = sshll.u32 (!%p291_p9), %s2252_s13, 9 }
  0x13   : > { %v1905_v26 = vpack.c.bf16 (!%p291_p9), %v352_v22, %v351_v21  ;;  %v1907_v27 = vpack.c.bf16 (!%p291_p9), %v370_v24, %v369_v23  ;;  %v353_v28 = vld [vmem:[%s2840_s2 + $0x40] sm:$0xff] (!%p291_p9)  ;;  %v354_v29 = vld [vmem:[%s2840_s2 + $0x48] sm:$0xff] (!%p291_p9)  ;;  %v371_v30 = vld [vmem:[%s2840_s2 + $0xd0] sm:$0xff] (!%p291_p9) }
  0x14   : > { %v372_v31 = vld [vmem:[%s2840_s2 + $0xd8] sm:$0xff] (!%p291_p9)  ;;  %v1909_v32 = vpack.c.bf16 (!%p291_p9), %v354_v29, %v353_v28  ;;  %v355_v34 = vld [vmem:[%s2840_s2 + $0x50] sm:$0xff] (!%p291_p9)  ;;  %v373_v36 = vld [vmem:[%s2840_s2 + $0xe0] sm:$0xff] (!%p291_p9) }
  0x15   : > { %s327_s27 = scalar_select %p326_p10, %s2252_s13, 1  ;;  %1898 = vmatpush3.bf16.msra.mxu0 %v1897_v13  ;;  %v1911_v33 = vpack.c.bf16 %v372_v31, %v371_v30  ;;  %v356_v35 = vld [vmem:[%s2840_s2 + $0x58] sm:$0xff]  ;;  %v374_v37 = vld [vmem:[%s2840_s2 + $0xe8] sm:$0xff]  ;;  %v357_v40 = vld [vmem:[%s2840_s2 + $0x60] sm:$0xff] }
  0x16   : > { %1900 = vmatprep.subr.bf16.mxu0 %v1899_v14  ;;  %v1913_v38 = vpack.c.bf16 %v356_v35, %v355_v34  ;;  %v1915_v39 = vpack.c.bf16 %v374_v37, %v373_v36  ;;  %v358_v41 = vld [vmem:[%s2840_s2 + $0x68] sm:$0xff]  ;;  %v375_v42 = vld [vmem:[%s2840_s2 + $0xf0] sm:$0xff]  ;;  %v376_v43 = vld [vmem:[%s2840_s2 + $0xf8] sm:$0xff] }
  0x17   : > { %s1737_s14 = sshll.u32 %s327_s27, 5  ;;  %v1917_v44 = vpack.c.bf16 %v358_v41, %v357_v40  ;;  %v1919_v45 = vpack.c.bf16 %v376_v43, %v375_v42  ;;  %v359_v46 = vld [vmem:[%s2840_s2 + $0x70] sm:$0xff]  ;;  %v360_v47 = vld [vmem:[%s2840_s2 + $0x78] sm:$0xff]  ;;  %v580_v58 = vld [vmem:[%s2843_s5] sm:$0xff]  ;;  %s2169_s27 = smov 120  }
  0x18   : > { %s2326_s29 = scalar_lea.vmem %s2838_s0, %s1737_s14  ;;  %v1921_v48 = vpack.c.bf16 %v360_v47, %v359_v46  ;;  %s2167_s14 = smov 122   ;;  %v581_v59 = vld [vmem:[%s2843_s5 + $0x8] sm:$0xff]  ;;  %v582_v60 = vld [vmem:[%s2843_s5 + $0x10] sm:$0xff]  ;;  %v583_v62 = vld [vmem:[%s2843_s5 + $0x18] sm:$0xff] }
  0x19   : > { %v2341_v25 = vld [vmem:[%s2326_s29 + $0x8] sm:$0xff]  ;;  %1902 = vmatpush3.bf16.msra.mxu0 %v1901_v19  ;;  %v2387_v49 = vld [vmem:[%s2326_s29] sm:$0xff]  ;;  %v2390_v50 = vld [vmem:[%s2326_s29 + $0x18] sm:$0xff]  ;;  %v1923_v61 = vpack.c.bf16 %v581_v59, %v580_v58  ;;  %v1927_v63 = vpack.c.bf16 %v583_v62, %v582_v60 }
  0x1a   : > { %441 = vmatprep.mubr.f32.mxu0 %v2341_v25  ;;  %1904 = vmatprep.subr.bf16.mxu0 %v1903_v20  ;;  %v2395_v51 = vld [vmem:[%s2326_s29 + $0x10] sm:$0xff]  ;;  %s2166_s29 = smov 123   ;;  %v584_v0 = vld [vmem:[%s2843_s5 + $0x20] sm:$0xff]  ;;  %v585_v1 = vld [vmem:[%s2843_s5 + $0x28] sm:$0xff] }
  0x1b   : > { %1924 = vmatprep.subr.bf16.mxu1 %v1923_v61  ;;  %v1931_v2 = vpack.c.bf16 %v585_v1, %v584_v0  ;;  %v586_v3 = vld [vmem:[%s2843_s5 + $0x30] sm:$0xff]  ;;  %v587_v4 = vld [vmem:[%s2843_s5 + $0x38] sm:$0xff]  ;;  %v455_v8 = vld [vmem:[%s2839_s1] sm:$0xff] }
  0x1c   : > { %1926 = vmatpush3.bf16.msra.mxu1 %v1923_v61  ;;  %v1935_v5 = vpack.c.bf16 %v587_v4, %v586_v3  ;;  %v1684_v11 = vld [vmem:[%s2839_s1 + $0x10] sm:$0xff]  ;;  %v456_v12 = vld [vmem:[%s2839_s1 + $0x8] sm:$0xff]  ;;  %v1683_v19 = vld [vmem:[%s2839_s1 + $0x98] sm:$0xff] }
  0x1d   : > { %1906 = vmatpush3.bf16.msra.mxu0 %v1905_v26  ;;  %1928 = vmatprep.subr.bf16.mxu1 %v1927_v63  ;;  %v1682_v14 = vld [vmem:[%s2839_s1 + $0x90] sm:$0xff]  ;;  %v1685_v20 = vld [vmem:[%s2839_s1 + $0x18] sm:$0xff]  ;;  %v1686_v22 = vld [vmem:[%s2839_s1 + $0x20] sm:$0xff] }
  0x1e   : > { %1908 = vmatprep.subr.bf16.mxu0 %v1907_v27  ;;  %v1687_v23 = vld [vmem:[%s2839_s1 + $0x28] sm:$0xff]  ;;  %v1688_v30 = vld [vmem:[%s2839_s1 + $0x30] sm:$0xff]  ;;  %v1689_v31 = vld [vmem:[%s2839_s1 + $0x38] sm:$0xff] }
  0x1f   : > { %v1690_v35 = vld [vmem:[%s2839_s1 + $0x40] sm:$0xff]  ;;  %v1691_v36 = vld [vmem:[%s2839_s1 + $0x48] sm:$0xff]  ;;  %v1693_v43 = vld [vmem:[%s2839_s1 + $0x58] sm:$0xff] }
  0x20   : > { %1930 = vmatpush3.bf16.msra.mxu1 %v1927_v63  ;;  %v588_v59 = vld [vmem:[%s2843_s5 + $0x40] sm:$0xff]  ;;  %v1697_v60 = vld [vmem:[%s2839_s1 + $0x78] sm:$0xff]  ;;  %v1696_v61 = vld [vmem:[%s2839_s1 + $0x70] sm:$0xff] }
  0x21   : > { %1910 = vmatpush3.bf16.msra.mxu0 %v1909_v32  ;;  %1932 = vmatprep.subr.bf16.mxu1 %v1931_v2  ;;  %vm1996_vm6 = vmpackc.low %vm756_vm4, %vm756_vm4 }
  0x22   : > { %1912 = vmatprep.subr.bf16.mxu0 %v1911_v33 }
  0x24   : > { %1934 = vmatpush3.bf16.msra.mxu1 %v1931_v2 }
  0x25   : > { %1914 = vmatpush3.bf16.msra.mxu0 %v1913_v38  ;;  %1936 = vmatprep.subr.bf16.mxu1 %v1935_v5 }
  0x26   : > { %1916 = vmatprep.subr.bf16.mxu0 %v1915_v39 }
  0x28   : > { %1938 = vmatpush3.bf16.msra.mxu1 %v1935_v5 }
  0x29   : > { %1918 = vmatpush3.bf16.msra.mxu0 %v1917_v44  ;;  %v1692_v44 = vld [vmem:[%s2839_s1 + $0x50] sm:$0xff]  ;;  %1858 = vmatprep.subr.mxu1 %v588_v59 }
  0x2a   : > { %1920 = vmatprep.subr.bf16.mxu0 %v1919_v45 }
  0x2c   : > { %1859 = vmatpush3.msra.mxu1 %v588_v59 }
  0x2d   : > { %1922 = vmatpush3.bf16.msra.mxu0 %v1921_v48  ;;  %v1695_v48 = vld [vmem:[%s2839_s1 + $0x68] sm:$0xff] }
  0x30   : > { %442 = vmatmul.mubr.f32.vlgmr.msra.gmra.mrb[0].mxu0 %v2387_v49 }
  0x31   : > { %446 = vmatprep.mubr.f32.mxu0 %v2390_v50 }
  0x34   : > { %447 = vmatmul.mubr.f32.gmra.mrb[2].mxu0 %v2395_v51 }
 0x103   : > { %v1771_v52 = vpop.f32.mrb[0].mxu0 }
 0x104   : > { %v1772_v53 = vpop.f32.mrb[1].mxu0 }
 0x105   : > { %v1773_v54 = vadd.f32 %v1772_v53, %v1771_v52  ;;  %v1694_v53 = vld [vmem:[%s2839_s1 + $0x60] sm:$0xff] }
 0x107   : > { %v1774_v55 = vpop.f32.mrb[2].mxu0  ;;  %479 = vrot.lane.b32.xlu1 %v1773_v54, %s2162_s22  ;;  %466 = vrot.lane.b32.xlu0 %v1773_v54, %s2163_s23  ;;  %v457_v13 = vmul.f32 %v1773_v54, %v455_v8  ;;  %v1699_v8 = vld [vmem:[%s2839_s1 + $0x88] sm:$0xff] }
 0x108   : > { %v1775_v56 = vpop.f32.mrb[3].mxu0 }
 0x109   : > { %v1776_v57 = vadd.f32 %v1775_v56, %v1774_v55  ;;  %v459_v21 = vadd.f32 %v1682_v14, %v457_v13 }
 0x10b   : > { %481 = vrot.lane.b32.xlu1 %v1776_v57, %s2162_s22  ;;  %492 = vrot.lane.b32.xlu0 %v1773_v54, %s2164_s24  ;;  %v458_v18 = vmul.f32 %v1776_v57, %v456_v12  ;;  %s2175_s22 = smov 116  }
 0x10d   : > { %v460_v28 = vadd.f32 %v1683_v19, %v458_v18 }
 0x10f   : > { %494 = vrot.lane.b32.xlu1 %v1776_v57, %s2164_s24  ;;  %505 = vrot.lane.b32.xlu0 %v1773_v54, %s2848_s25  ;;  %s2168_s24 = smov 121  }
 0x113   : > { %507 = vrot.lane.b32.xlu1 %v1776_v57, %s2848_s25  ;;  %468 = vrot.lane.b32.xlu0 %v1776_v57, %s2163_s23  ;;  %s2852_s23 = smov 124   ;;  %s323_s25 = sand.u32 1, %s2152_s10  }
 0x114   : > { %s1675_s16 = sshll.u32 %s323_s25, 5  ;;  %s2797_s13 = scalar_lea.sflag [#allocation3], %s323_s25 }
 0x115   : > { %s325_s21 = scalar_lea.vmem [#allocation2], %s1675_s16 }
 0x117   : > { %520 = vrot.lane.b32.xlu1 %v1776_v57, %s2166_s29  ;;  %518 = vrot.lane.b32.xlu0 %v1773_v54, %s2166_s29  ;;  %s2170_s29 = smov 36  }
 0x11b   : > { %533 = vrot.lane.b32.xlu1 %v1776_v57, %s2167_s14  ;;  %531 = vrot.lane.b32.xlu0 %v1773_v54, %s2167_s14  ;;  %s2178_s14 = smov [#allocation2]  }
 0x11f   : > { %546 = vrot.lane.b32.xlu1 %v1776_v57, %s2168_s24  ;;  %544 = vrot.lane.b32.xlu0 %v1773_v54, %s2168_s24  ;;  %s2791_s24 = scalar_lea.hbm %s2847_s9, %s1738_s17 }
 0x123   : > { %559 = vrot.lane.b32.xlu1 %v1776_v57, %s2169_s27  ;;  %557 = vrot.lane.b32.xlu0 %v1773_v54, %s2169_s27 }
 0x179   : > { %v480_v6 = vpop.permute.xlu1 %479  ;;  %v467_v7 = vpop.permute.xlu0 %466 }
 0x17a   : > { %v472_v17 = vmul.f32 %v1684_v11, %v467_v7  ;;  %v485_v32 = vmul.f32 %v1686_v22, %v480_v6 }
 0x17c   : > { %v474_v27 = vadd.f32 %v472_v17, %v459_v21 }
 0x17d   : > { %v482_v9 = vpop.permute.xlu1 %481  ;;  %v493_v10 = vpop.permute.xlu0 %492 }
 0x17e   : > { %v486_v33 = vmul.f32 %v1687_v23, %v482_v9  ;;  %v487_v39 = vadd.f32 %v485_v32, %v474_v27  ;;  %v498_v40 = vmul.f32 %v1688_v30, %v493_v10  ;;  %v1698_v9 = vld [vmem:[%s2839_s1 + $0x80] sm:$0xff]  ;;  %v336_v30 = vld [vmem:[%s2845_s7 + $0x8] sm:$0xff] }
 0x180   : > { %v500_v55 = vadd.f32 %v498_v40, %v487_v39  ;;  %v888_v40 = vld [vmem:[%s2842_s4 + $0x38] sm:$0xff] }
 0x181   : > { %v495_v15 = vpop.permute.xlu1 %494  ;;  %v506_v16 = vpop.permute.xlu0 %505 }
 0x182   : > { %v499_v41 = vmul.f32 %v1689_v31, %v495_v15  ;;  %v511_v45 = vmul.f32 %v1690_v35, %v506_v16  ;;  %v753_v31 = vld [vmem:[%s2844_s6] sm:$0xff] }
 0x183   : > { %v755_v32 = vcombine.high %v753_v31, %v753_v31 }
 0x184   : > { %v513_v62 = vadd.f32 %v511_v45, %v500_v55  ;;  %v883_v45 = vld [vmem:[%s2842_s4 + $0x10] sm:$0xff]  ;;  %v896_v55 = vld [vmem:[%s2842_s4 + $0x78] sm:$0xff] }
 0x185   : > { %v508_v24 = vpop.permute.xlu1 %507  ;;  %v469_v26 = vpop.permute.xlu0 %468  ;;  %1704 = vmatprep.subr.msk.mxu1 %vm763_vm3, %v755_v32 }
 0x186   : > { %v473_v29 = vmul.f32 %v1685_v20, %v469_v26  ;;  %v512_v46 = vmul.f32 %v1691_v36, %v508_v24  ;;  %v335_v26 = vld [vmem:[%s2845_s7] sm:$0xff]  ;;  %v882_v36 = vld [vmem:[%s2842_s4 + $0x8] sm:$0xff] }
 0x187   : > { %1867 = vmatprep.mubr.msk.f32.mxu0 %vm671_vm2, %v335_v26 }
 0x188   : > { %v475_v34 = vadd.f32 %v473_v29, %v460_v28 }
 0x189   : > { %v521_v37 = vpop.permute.xlu1 %520  ;;  %v519_v38 = vpop.permute.xlu0 %518 }
 0x18a   : > { %v488_v42 = vadd.f32 %v486_v33, %v475_v34  ;;  %v525_v57 = vmul.f32 %v1693_v43, %v521_v37  ;;  %v524_v58 = vmul.f32 %v1692_v44, %v519_v38  ;;  %v2171_v33 = vmov 0.0   ;;  %v886_v37 = vld [vmem:[%s2842_s4 + $0x28] sm:$0xff]  ;;  %v884_v38 = vld [vmem:[%s2842_s4 + $0x18] sm:$0xff] }
 0x18b   : > { %v1943_v39 = vpack.c.bf16 %v886_v37, %v882_v36  ;;  %v1951_v43 = vpack.c.bf16 %v888_v40, %v884_v38  ;;  %v1081_v40 = vld [vmem:[%s2841_s3] sm:$0xff] }
 0x18c   : > { %v501_v47 = vadd.f32 %v499_v41, %v488_v42  ;;  %v526_v4 = vadd.f32 %v524_v58, %v513_v62  ;;  %v881_v41 = vld [vmem:[%s2842_s4] sm:$0xff]  ;;  %v898_v62 = vld [vmem:[%s2842_s4 + $0x88] sm:$0xf] }
 0x18d   : > { %v534_v52 = vpop.permute.xlu1 %533  ;;  %v532_v54 = vpop.permute.xlu0 %531  ;;  %v885_v42 = vld [vmem:[%s2842_s4 + $0x20] sm:$0xff] }
 0x18e   : > { %v514_v56 = vadd.f32 %v512_v46, %v501_v47  ;;  %v538_v0 = vmul.f32 %v1695_v48, %v534_v52  ;;  %v537_v1 = vmul.f32 %v1694_v53, %v532_v54  ;;  %v1945_v44 = vpack.c.bf16 %v885_v42, %v881_v41  ;;  %v887_v46 = vld [vmem:[%s2842_s4 + $0x30] sm:$0xff]  ;;  %v890_v48 = vld [vmem:[%s2842_s4 + $0x48] sm:$0xff]  ;;  %v892_v53 = vld [vmem:[%s2842_s4 + $0x58] sm:$0xff] }
 0x18f   : > { %v1953_v47 = vpack.c.bf16 %v887_v46, %v883_v45  ;;  %v894_v52 = vld [vmem:[%s2842_s4 + $0x68] sm:$0xff]  ;;  %v1955_v58 = vpack.c.bf16 %v896_v55, %v892_v53  ;;  %v1099_v42 = vld [vmem:[%s2841_s3 + $0x90] sm:$0xff] }
 0x190   : > { %v527_v63 = vadd.f32 %v525_v57, %v514_v56  ;;  %v539_v10 = vadd.f32 %v537_v1, %v526_v4  ;;  %v1947_v54 = vpack.c.bf16 %v894_v52, %v890_v48  ;;  %v889_v56 = vld [vmem:[%s2842_s4 + $0x40] sm:$0xff]  ;;  %v1098_v4 = vld [vmem:[%s2841_s3 + $0x88] sm:$0xff]  ;;  %v1084_v48 = vld [vmem:[%s2841_s3 + $0x18] sm:$0xff] }
 0x191   : > { %v547_v2 = vpop.permute.xlu1 %546  ;;  %v545_v3 = vpop.permute.xlu0 %544  ;;  %v893_v57 = vld [vmem:[%s2842_s4 + $0x60] sm:$0xff]  ;;  %v1082_v41 = vld [vmem:[%s2841_s3 + $0x8] sm:$0xff] }
 0x192   : > { %v540_v5 = vadd.f32 %v538_v0, %v527_v63  ;;  %v551_v6 = vmul.f32 %v1697_v60, %v547_v2  ;;  %v550_v7 = vmul.f32 %v1696_v61, %v545_v3  ;;  %v1949_v59 = vpack.c.bf16 %v893_v57, %v889_v56  ;;  %v891_v60 = vld [vmem:[%s2842_s4 + $0x50] sm:$0xff]  ;;  %v900_v0 = vld [vmem:[%s2842_s4 + $0x98] sm:$0xf]  ;;  %v897_v1 = vld [vmem:[%s2842_s4 + $0x80] sm:$0xf] }
 0x193   : > { %v895_v61 = vld [vmem:[%s2842_s4 + $0x70] sm:$0xff]  ;;  %v1097_v3 = vld [vmem:[%s2841_s3 + $0x80] sm:$0xff]  ;;  %v1102_v53 = vld [vmem:[%s2841_s3 + $0xa8] sm:$0xff] }
 0x194   : > { %v553_v13 = vadd.f32 %v551_v6, %v540_v5  ;;  %v552_v14 = vadd.f32 %v550_v7, %v539_v10  ;;  %v1957_v63 = vpack.c.bf16 %v895_v61, %v891_v60  ;;  %v899_v2 = vld [vmem:[%s2842_s4 + $0x90] sm:$0xf]  ;;  %v1959_v5 = vpack.c.bf16 %v1098_v4, %v1097_v3  ;;  %v1101_v52 = vld [vmem:[%s2841_s3 + $0xa0] sm:$0xff] }
 0x195   : > { %v560_v11 = vpop.permute.xlu1 %559  ;;  %v558_v12 = vpop.permute.xlu0 %557  ;;  %v1967_v56 = vpack.c.bf16 %v1102_v53, %v1101_v52  ;;  %v1085_v57 = vld [vmem:[%s2841_s3 + $0x20] sm:$0xff] }
 0x196   : > { %v564_v15 = vmul.f32 %v1699_v8, %v560_v11  ;;  %v563_v16 = vmul.f32 %v1698_v9, %v558_v12  ;;  %v1089_v4 = vld [vmem:[%s2841_s3 + $0x40] sm:$0xff] }
 0x198   : > { %v2489_v17 = vadd.f32 %v564_v15, %v553_v13  ;;  %v2491_v18 = vadd.f32 %v563_v16, %v552_v14 }
 0x19a   : > { %v568_v19 = vmul.f32 %v2489_v17, %v2489_v17  ;;  %v567_v20 = vmul.f32 %v2491_v18, %v2491_v18 }
 0x19c   : > { %573 = vrot.lane.b32.xlu1 %v568_v19, %s2170_s29  ;;  %571 = vrot.lane.b32.xlu0 %v567_v20, %s2170_s29 }
 0x20e   : > { %v574_v21 = vpop.permute.xlu1 %573  ;;  %v572_v22 = vpop.permute.xlu0 %571 }
 0x20f   : > { %v579_v23 = vsel %vm577_vm0, %v2489_v17, %v574_v21  ;;  %v578_v24 = vsel %vm577_vm0, %v2491_v18, %v572_v22  ;;  %v1708_v22 = vld [vmem:[%s2839_s1 + $0xa0] sm:$0xff] }
 0x210   : > { %1860 = vmatprep.mubr.msk.f32.mxu1 %vm589_vm1, %v578_v24  ;;  %v1710_v24 = vld [vmem:[%s2839_s1 + $0xb0] sm:$0xff] }
 0x211   : > { %1861 = vmatmul.mubr.msk.f32.vlgmr.msra.gmra.mrb[0].mxu1 %vm589_vm1, %v579_v23 }
 0x212   : > { %1705 = vmatpush1.msk.msra.mxu1 %vm763_vm3, %v753_v31  ;;  %832 = vmatprep.mubr.f32.mxu1 %v2171_v33  ;;  %v1711_v31 = vld [vmem:[%s2839_s1 + $0xb8] sm:$0xff] }
 0x213   : > { %1944 = vmatprep.subr.bf16.mxu1 %v1943_v39 }
 0x2e4   : > { %v1862_v27 = vpop.f32.mrb[0].mxu1 }
 0x2e5   : > { %v662_v28 = vpop.f32.mrb[1].mxu1 }
 0x2e6   : > { %v1939_v29 = vpack.c.bf16 %v1862_v27, %v662_v28 }
 0x2e8   : > { %1940 = vmatprep.subr.bf16.mxu0 %v1939_v29 }
 0x2e9   : > { %1942 = vmatpush3.bf16.msra.mxu0 %v1939_v29  ;;  %v1709_v29 = vld [vmem:[%s2839_s1 + $0xa8] sm:$0xff] }
 0x2ea   : > { %1952 = vmatprep.subr.bf16.mxu0 %v1951_v43  ;;  %v1100_v43 = vld [vmem:[%s2841_s3 + $0x98] sm:$0xff] }
 0x2eb   : > { %v1963_v46 = vpack.c.bf16 %v1100_v43, %v1099_v42 }
 0x2ec   : > { %1868 = vmatmul.mubr.msk.f32.vlgmr.msra.gmra.mrb[4].mxu0 %vm671_vm2, %v336_v30 }
 0x2ed   : > { %1060 = vmatprep.mubr.f32.mxu0 %v2171_v33  ;;  %1954 = vmatpush1.bf16.msra.mxu0 %v1953_v47  ;;  %v1083_v47 = vld [vmem:[%s2841_s3 + $0x10] sm:$0xff] }
 0x2ee   : > { %1956 = vmatprep.subr.bf16.mxu0 %v1955_v58  ;;  %v1086_v58 = vld [vmem:[%s2841_s3 + $0x28] sm:$0xff] }
 0x2ef   : > { %v1969_v60 = vpack.c.bf16 %v1086_v58, %v1085_v57 }
 0x2f1   : > { %1958 = vmatpush1.bf16.msra.mxu0 %v1957_v63  ;;  %v1088_v63 = vld [vmem:[%s2841_s3 + $0x38] sm:$0xff] }
 0x2f2   : > { %1718 = vmatprep.subr.msk.mxu0 %vm763_vm3, %v900_v0  ;;  %v1105_v0 = vld [vmem:[%s2841_s3 + $0xc0] sm:$0xff] }
 0x2f5   : > { %1719 = vmatpush1.msk.msra.mxu0 %vm763_vm3, %v899_v2 }
 0x3bf   : > { %v1869_v34 = vpop.f32.mrb[4].mxu0 }
 0x3c0   : > { %v744_v35 = vpop.f32.mrb[5].mxu0 }
 0x3c1   : > { %1706 = vmatmul.mubr.msk.f32.vlgmr.msra.gmra.mrb[2].mxu1 %vm756_vm4, %v744_v35 }
 0x3c2   : > { %838 = vmatprep.mubr.f32.mxu1 %v2171_v33  ;;  %1946 = vmatpush1.bf16.msra.mxu1 %v1945_v44  ;;  %v1961_v44 = vpack.c.bf16 %v1082_v41, %v1081_v40 }
 0x3c3   : > { %1948 = vmatprep.subr.bf16.mxu1 %v1947_v54  ;;  %v1965_v54 = vpack.c.bf16 %v1084_v48, %v1083_v47 }
 0x3c5   : > { %1707 = vmatmul.mubr.msk.f32.gmra.mrb[4].mxu1 %vm756_vm4, %v1869_v34 }
 0x3c6   : > { %983 = vmatprep.mubr.f32.mxu1 %v2171_v33  ;;  %1950 = vmatpush1.bf16.msra.mxu1 %v1949_v59  ;;  %v1104_v59 = vld [vmem:[%s2841_s3 + $0xb8] sm:$0xff] }
 0x3c7   : > { %1714 = vmatprep.subr.msk.mxu1 %vm763_vm3, %v898_v62  ;;  %v1087_v62 = vld [vmem:[%s2841_s3 + $0x30] sm:$0xff] }
 0x3c8   : > { %v1973_v2 = vpack.c.bf16 %v1088_v63, %v1087_v62  ;;  %v2172_v62 = vmov 0   ;;  %v2173_v63 = vmov 1  }
 0x3c9   : > { %2062 = vset.pattern.permute.xlu1 %v2172_v62  ;;  %2064 = vset.pattern.permute.xlu0 %v2173_v63 }
 0x3ca   : > { %1715 = vmatpush1.msk.msra.mxu1 %vm763_vm3, %v897_v1  ;;  %v1106_v1 = vld [vmem:[%s2841_s3 + $0xc8] sm:$0xff] }
 0x3cb   : > { %1960 = vmatprep.subr.bf16.mxu1 %v1959_v5  ;;  %v1975_v3 = vpack.c.bf16 %v1106_v1, %v1105_v0  ;;  %v1090_v5 = vld [vmem:[%s2841_s3 + $0x48] sm:$0xff] }
 0x494   : > { %v834_v6 = vpop.f32.mrb[2].mxu1 }
 0x495   : > { %v845_v7 = vmul.f32 %v834_v6, %v834_v6  ;;  %v836_v8 = vpop.f32.mrb[3].mxu1  ;;  %v855_v20 = vsub.f32 %v2491_v18, %v834_v6  ;;  %v1107_v6 = vld [vmem:[%s2841_s3 + $0xd0] sm:$0xff] }
 0x497   : > { %v847_v9 = vsub.f32 %v836_v8, %v845_v7  ;;  %v1108_v7 = vld [vmem:[%s2841_s3 + $0xd8] sm:$0xff]  ;;  %v1977_v8 = vpack.c.bf16 %v1090_v5, %v1089_v4 }
 0x498   : > { %v840_v10 = vpop.f32.mrb[4].mxu1 }
 0x499   : > { %v849_v11 = vmax.f32 %v847_v9, 0.0  ;;  %v846_v12 = vmul.f32 %v840_v10, %v840_v10  ;;  %v842_v13 = vpop.f32.mrb[5].mxu1  ;;  %v856_v27 = vsub.f32 %v2489_v17, %v840_v10  ;;  %v1979_v9 = vpack.c.bf16 %v1108_v7, %v1107_v6  ;;  %v1091_v10 = vld [vmem:[%s2841_s3 + $0x50] sm:$0xff] }
 0x49b   : > { %v851_v14 = vadd.f32 1e-05, %v849_v11  ;;  %v848_v15 = vsub.f32 %v842_v13, %v846_v12  ;;  %v1092_v11 = vld [vmem:[%s2841_s3 + $0x58] sm:$0xff]  ;;  %v1109_v12 = vld [vmem:[%s2841_s3 + $0xe0] sm:$0xff]  ;;  %v1110_v13 = vld [vmem:[%s2841_s3 + $0xe8] sm:$0xff] }
 0x49d   : > { %2066 = vrsqrt.f32 %v851_v14  ;;  %v850_v16 = vmax.f32 %v848_v15, 0.0  ;;  %v1981_v14 = vpack.c.bf16 %v1092_v11, %v1091_v10  ;;  %v1983_v15 = vpack.c.bf16 %v1110_v13, %v1109_v12 }
 0x49f   : > { %v852_v19 = vadd.f32 1e-05, %v850_v16  ;;  %v1093_v16 = vld [vmem:[%s2841_s3 + $0x60] sm:$0xff] }
 0x4a1   : > { %2068 = vrsqrt.f32 %v852_v19  ;;  %v1094_v19 = vld [vmem:[%s2841_s3 + $0x68] sm:$0xff] }
 0x4a7   : > { %v2067_v21 = vpop.eup %2066 }
 0x4a8   : > { %v857_v23 = vmul.f32 %v2067_v21, %v855_v20  ;;  %v1985_v20 = vpack.c.bf16 %v1094_v19, %v1093_v16  ;;  %v1111_v21 = vld [vmem:[%s2841_s3 + $0xf0] sm:$0xff] }
 0x4aa   : > { %v862_v26 = vmul.f32 %v1708_v22, %v857_v23  ;;  %v1112_v22 = vld [vmem:[%s2841_s3 + $0xf8] sm:$0xff] }
 0x4ab   : > { %v2069_v28 = vpop.eup %2068  ;;  %v1987_v23 = vpack.c.bf16 %v1112_v22, %v1111_v21 }
 0x4ac   : > { %v867_v30 = vadd.f32 %v1710_v24, %v862_v26  ;;  %v858_v18 = vmul.f32 %v2069_v28, %v856_v27  ;;  %v1095_v24 = vld [vmem:[%s2841_s3 + $0x70] sm:$0xff]  ;;  %v1096_v26 = vld [vmem:[%s2841_s3 + $0x78] sm:$0xff] }
 0x4ad   : > { %v1989_v27 = vpack.c.bf16 %v1096_v26, %v1095_v24 }
 0x4ae   : > { %v1712_v32 = vmul.f32 -1.442695, %v867_v30  ;;  %v863_v34 = vmul.f32 %v1709_v29, %v858_v18 }
 0x4b0   : > { %2070 = vpow2.f32 %v1712_v32  ;;  %v868_v35 = vadd.f32 %v1711_v31, %v863_v34 }
 0x4b2   : > { %v1713_v36 = vmul.f32 -1.442695, %v868_v35 }
 0x4b4   : > { %2072 = vpow2.f32 %v1713_v36 }
 0x4ba   : > { %v2071_v37 = vpop.eup %2070 }
 0x4bb   : > { %v875_v38 = vadd.f32 1.0, %v2071_v37 }
 0x4bd   : > { %2074 = vrcp.f32 %v875_v38 }
 0x4be   : > { %v2073_v17 = vpop.eup %2072 }
 0x4bf   : > { %v876_v39 = vadd.f32 1.0, %v2073_v17 }
 0x4c1   : > { %2076 = vrcp.f32 %v876_v39 }
 0x4c7   : > { %v2075_v45 = vpop.eup %2074 }
 0x4c8   : > { %1716 = vmatmul.mubr.msk.f32.vlgmr.msra.gmra.mrb[6].mxu1 %vm577_vm0, %v2075_v45  ;;  %1720 = vmatmul.mubr.msk.f32.vlgmr.msra.gmra.mrb[6].mxu0 %vm577_vm0, %v2075_v45 }
 0x4c9   : > { %989 = vmatprep.mubr.f32.mxu1 %v2171_v33  ;;  %1066 = vmatprep.mubr.f32.mxu0 %v2171_v33  ;;  %v1103_v33 = vld [vmem:[%s2841_s3 + $0xb0] sm:$0xff] }
 0x4ca   : > { %1962 = vmatpush3.bf16.msra.mxu1 %v1961_v44  ;;  %v1971_v61 = vpack.c.bf16 %v1104_v59, %v1103_v33 }
 0x4cb   : > { %v2077_v55 = vpop.eup %2076  ;;  %1964 = vmatprep.subr.bf16.mxu1 %v1963_v46 }
 0x4cc   : > { %1717 = vmatmul.mubr.msk.f32.gmra.mrb[8].mxu1 %vm577_vm0, %v2077_v55  ;;  %1721 = vmatmul.mubr.msk.f32.gmra.mrb[8].mxu0 %vm577_vm0, %v2077_v55 }
 0x4ce   : > { %1966 = vmatpush3.bf16.msra.mxu1 %v1965_v54  ;;  %v1680_v54 = vld [vmem:[%s2845_s7 + $0x20] sm:$0xff] }
 0x4cf   : > { %1968 = vmatprep.subr.bf16.mxu1 %v1967_v56  ;;  %1874 = vmatprep.mubr.msk.f32.mxu0 %vm671_vm2, %v1680_v54 }
 0x4d2   : > { %1970 = vmatpush3.bf16.msra.mxu1 %v1969_v60 }
 0x4d3   : > { %1972 = vmatprep.subr.bf16.mxu1 %v1971_v61  ;;  %v1681_v61 = vld [vmem:[%s2845_s7 + $0x28] sm:$0xff] }
 0x4d6   : > { %1974 = vmatpush3.bf16.msra.mxu1 %v1973_v2 }
 0x4d7   : > { %1976 = vmatprep.subr.bf16.mxu1 %v1975_v3 }
 0x4da   : > { %1978 = vmatpush3.bf16.msra.mxu1 %v1977_v8 }
 0x4db   : > { %1980 = vmatprep.subr.bf16.mxu1 %v1979_v9 }
 0x4de   : > { %1982 = vmatpush3.bf16.msra.mxu1 %v1981_v14  ;;  %v2741_v14 = vld [vmem:[%s2846_s8] sm:$0xff] }
 0x4df   : > { %1984 = vmatprep.subr.bf16.mxu1 %v1983_v15  ;;  %v2746_v15 = vld [vmem:[%s2846_s8 + $0x8] sm:$0xff] }
 0x4e2   : > { %1986 = vmatpush3.bf16.msra.mxu1 %v1985_v20 }
 0x4e3   : > { %1988 = vmatprep.subr.bf16.mxu1 %v1987_v23 }
 0x4e6   : > { %1990 = vmatpush3.bf16.msra.mxu1 %v1989_v27 }
 0x59b   : > { %v985_v28 = vpop.f32.mrb[6].mxu1  ;;  %v1062_v29 = vpop.f32.mrb[6].mxu0 }
 0x59c   : > { %v1073_v30 = vmul.f32 %v985_v28, %v2387_v49  ;;  %v987_v18 = vpop.f32.mrb[7].mxu1  ;;  %v1064_v31 = vpop.f32.mrb[7].mxu0 }
 0x59d   : > { %v1074_v32 = vmul.f32 %v987_v18, %v2341_v25 }
 0x59e   : > { %v2702_v34 = vmul.f32 %v1073_v30, %v1062_v29 }
 0x59f   : > { %v2704_v35 = vmul.f32 %v1074_v32, %v1064_v31  ;;  %v991_v36 = vpop.f32.mrb[8].mxu1  ;;  %v1068_v37 = vpop.f32.mrb[8].mxu0 }
 0x5a0   : > { %v1075_v38 = vmul.f32 %v991_v36, %v2395_v51  ;;  %v993_v17 = vpop.f32.mrb[9].mxu1  ;;  %v1070_v39 = vpop.f32.mrb[9].mxu0 }
 0x5a1   : > { %v1076_v40 = vmul.f32 %v993_v17, %v2390_v50  ;;  %1177 = vmatprep.mubr.f32.mxu1 %v2704_v35 }
 0x5a2   : > { %v2709_v41 = vmul.f32 %v1075_v38, %v1068_v37  ;;  %1178 = vmatmul.mubr.f32.vlgmr.msra.gmra.mrb[10].mxu1 %v2702_v34 }
 0x5a3   : > { %v2712_v49 = vmul.f32 %v1076_v40, %v1070_v39 }
 0x5a5   : > { %1182 = vmatprep.mubr.f32.mxu1 %v2712_v49 }
 0x5a6   : > { %1183 = vmatmul.mubr.f32.gmra.mrb[12].mxu1 %v2709_v41 }
 0x675   : > { %v1824_v25 = vpop.f32.mrb[10].mxu1 }
 0x676   : > { %v1825_v42 = vpop.f32.mrb[11].mxu1 }
 0x677   : > { %v2716_v43 = vadd.f32 %v1825_v42, %v1824_v25 }
 0x679   : > { %v1827_v51 = vpop.f32.mrb[12].mxu1  ;;  %v1188_v50 = vsel %vm756_vm4, %v2716_v43, 0.0  ;;  %v1194_v44 = vmul.f32 %v2716_v43, %v2716_v43 }
 0x67a   : > { %1189 = vadd.xlane.f32.xlu0 %v1188_v50  ;;  %v1828_v45 = vpop.f32.mrb[13].mxu1 }
 0x67b   : > { %v2722_v46 = vadd.f32 %v1828_v45, %v1827_v51  ;;  %v1196_v47 = vsel %vm756_vm4, %v1194_v44, 0.0  ;;  %v1679_v51 = vld [vmem:[%s2845_s7 + $0x18] sm:$0xff]  ;;  %v1678_v45 = vld [vmem:[%s2845_s7 + $0x10] sm:$0xff] }
 0x67d   : > { %v1191_v48 = vsel %vm756_vm4, %v2722_v46, 0.0  ;;  %v1195_v52 = vmul.f32 %v2722_v46, %v2722_v46 }
 0x67e   : > { %1197 = vadd.xlane.f32.xlu0 %v1196_v47  ;;  %1192 = vadd.xlane.f32.xlu1 %v1191_v48 }
 0x67f   : > { %v1199_v53 = vsel %vm756_vm4, %v1195_v52, 0.0 }
 0x682   : > { %1200 = vadd.xlane.f32.xlu0 %v1199_v53 }
 0x707   : > { %v1190_v55 = vpop.xlane.xlu0 %1189 }
 0x70b   : > { %v1198_v56 = vpop.xlane.xlu0 %1197  ;;  %v1193_v57 = vpop.xlane.xlu1 %1192 }
 0x70c   : > { %v1203_v33 = vsel %vm1202_vm5, %v1190_v55, %v1198_v56 }
 0x70f   : > { %v1201_v58 = vpop.xlane.xlu0 %1200 }
 0x710   : > { %v1204_v59 = vsel %vm1202_vm5, %v1193_v57, %v1201_v58 }
 0x711   : > { %v1991_v60 = vpack.c.bf16 %v1204_v59, %v1203_v33 }
 0x713   : > { %1992 = vmatprep.subr.bf16.mxu0 %v1991_v60 }
 0x714   : > { %1994 = vmatpush3.bf16.msra.mxu0 %v1991_v60 }
 0x717   : > { %1875 = vmatmul.mubr.msk.f32.vlgmr.msra.gmra.mrb[10].mxu0 %vm671_vm2, %v1681_v61 }
 0x7ea   : > { %v1876_v0 = vpop.f32.mrb[10].mxu0 }
 0x7eb   : > { %v1287_v1 = vmul.f32 %v1876_v0, %v1876_v0  ;;  %v1277_v2 = vpop.f32.mrb[11].mxu0 }
 0x7ec   : > { %v1286_v3 = vmul.f32 %v1277_v2, %v1277_v2 }
 0x7ed   : > { %1292 = vrot.lane.b32.xlu0 %v1287_v1, %s2174_s28 }
 0x7ee   : > { %1290 = vrot.lane.b32.xlu1 %v1286_v3, %s2174_s28  ;;  %s2177_s28 = smov 108  }
 0x7f2   : > { %1302 = vperm.xlu1 %2062, %v1277_v2  }
 0x7f6   : > { %1307 = vperm.xlu1 %2062, %v1876_v0  }
 0x7fa   : > { %2063 = vset.pattern.permute.xlu1 %v2173_v63 }
 0x85f   : > { %v1293_v4 = vpop.permute.xlu0 %1292 }
 0x860   : > { %v1297_v5 = vsub.f32 %v1876_v0, %v1293_v4  ;;  %v1291_v6 = vpop.permute.xlu1 %1290 }
 0x861   : > { %v1296_v7 = vsub.f32 %v1277_v2, %v1291_v6 }
 0x862   : > { %v1299_v8 = vmax.f32 %v1297_v5, 0.0 }
 0x863   : > { %v1298_v9 = vmax.f32 %v1296_v7, 0.0 }
 0x864   : > { %v1313_v10 = vadd.f32 1e-05, %v1299_v8 }
 0x865   : > { %v1312_v11 = vadd.f32 1e-05, %v1298_v9 }
 0x866   : > { %2078 = vrsqrt.f32 %v1313_v10 }
 0x867   : > { %2080 = vrsqrt.f32 %v1312_v11 }
 0x870   : > { %v2079_v12 = vpop.eup %2078 }
 0x871   : > { %v2081_v13 = vpop.eup %2080  ;;  %1323 = vperm.xlu1 %2063, %v2079_v12   ;;  %v1303_v16 = vpop.permute.xlu1 %1302 }
 0x872   : > { %1318 = vperm.xlu0 %2064, %v2081_v13   ;;  %v1310_v21 = vsub.f32 %v2716_v43, %v1303_v16 }
 0x875   : > { %1340 = vrot.lane.b32.xlu1 %v2741_v14, %s2169_s27  ;;  %v1308_v19 = vpop.permute.xlu1 %1307 }
 0x876   : > { %1342 = vrot.lane.b32.xlu0 %v2746_v15, %s2169_s27  ;;  %v1311_v24 = vsub.f32 %v2722_v46, %v1308_v19 }
 0x879   : > { %1348 = vrot.lane.b32.xlu1 %v2741_v14, %s2175_s22 }
 0x87a   : > { %1350 = vrot.lane.b32.xlu0 %v2746_v15, %s2175_s22  ;;  %s1609_s22 = sshll.u32 %s325_s21, 4  ;;  %s2793_s22 = int_to_ptr.vmem [resolvable:$true] %s1609_s22 }
 0x87b   : > { %s2098_s29 = scalar_lea.vmem %s2793_s22, 512 }
 0x87c   : > { %p2099_p11 = scmp.ne.s32.totalorder %s2793_s22, %s2098_s29 }
 0x87d   : > { %1332 = vrot.lane.b32.xlu1 %v2741_v14, %s2852_s23 }
 0x87e   : > { %1334 = vrot.lane.b32.xlu0 %v2746_v15, %s2852_s23  ;;  %p2100_p12 = pnand %p2099_p11, %p2269_p5 }
 0x880   : > { %p2101_p13 = pneg %p2100_p12 }
 0x8f0   : > { %v1324_v20 = vpop.permute.xlu1 %1323 }
 0x8f1   : > { %v1319_v22 = vpop.permute.xlu0 %1318  ;;  %v1327_v28 = vmul.f32 %v1324_v20, %v1311_v24 }
 0x8f2   : > { %v1326_v23 = vmul.f32 %v1319_v22, %v1310_v21 }
 0x8f3   : > { %v1329_v25 = vmul.f32 %v1327_v28, %v2746_v15 }
 0x8f4   : > { %v1341_v26 = vpop.permute.xlu1 %1340  ;;  %v1328_v37 = vmul.f32 %v1326_v23, %v2741_v14 }
 0x8f5   : > { %v1343_v27 = vpop.permute.xlu0 %1342  ;;  %v1346_v29 = vmul.f32 %v1341_v26, %v1326_v23 }
 0x8f6   : > { %v1347_v30 = vmul.f32 %v1343_v27, %v1327_v28 }
 0x8f8   : > { %v1349_v18 = vpop.permute.xlu1 %1348 }
 0x8f9   : > { %v1354_v31 = vadd.f32 %v1349_v18, %v1346_v29  ;;  %v1351_v32 = vpop.permute.xlu0 %1350 }
 0x8fa   : > { %v1355_v36 = vadd.f32 %v1351_v32, %v1347_v30 }
 0x8fc   : > { %v1995_v38 = vpack.c.bf16 %v1355_v36, %v1354_v31  ;;  %v1333_v17 = vpop.permute.xlu1 %1332 }
 0x8fd   : > { %v1338_v39 = vadd.f32 %v1333_v17, %v1328_v37  ;;  %v1335_v40 = vpop.permute.xlu0 %1334 }
 0x8fe   : > { %1997 = vmatprep.subr.msk.bf16.mxu0 %vm1996_vm6, %v1995_v38  ;;  %v1339_v42 = vadd.f32 %v1335_v40, %v1329_v25 }
 0x8ff   : > { %2000 = vmatpush3.bf16.xpose.msk.msra.mxu0 %vm1996_vm6, %v1995_v38  ;;  %1881 = vmatprep.mubr.msk.f32.mxu0 %vm756_vm4, %v1338_v39 }
 0x906   : > { %1882 = vmatmul.mubr.msk.f32.vlgmr.msra.gmra.mrb[12].mxu0 %vm756_vm4, %v1339_v42 }
 0x9d9   : > { %v1883_v43 = vpop.f32.mrb[12].mxu0 }
 0x9da   : > { %v1460_v50 = vmul.f32 0.5, %v1883_v43  ;;  %v1450_v44 = vpop.f32.mrb[13].mxu0 }
 0x9db   : > { %v1459_v46 = vmul.f32 0.5, %v1450_v44 }
 0x9dc   : > { %v1462_v47 = vadd.f32 %v1679_v51, %v1460_v50 }
 0x9dd   : > { %v1461_v48 = vadd.f32 %v1678_v45, %v1459_v46 }
 0x9de   : > { %v1466_v52 = vsel %vm671_vm2, %v1462_v47, -inf }
 0x9df   : > { %1467 = vmax.xlane.f32.xlu0 %v1466_v52  ;;  %v1463_v53 = vsel %vm671_vm2, %v1461_v48, -inf }
 0x9e0   : > { %1464 = vmax.xlane.f32.xlu1 %v1463_v53 }
 0x9f1   : > { %1358 = vrot.lane.b32.xlu1 %v2746_v15, %s2176_s26 }
 0x9f5   : > { %1356 = vrot.lane.b32.xlu0 %v2741_v14, %s2176_s26  ;;  %s2102_s26 = sshll.u32 %s2178_s14, 4  ;;  %s2103_s26 = int_to_ptr.vmem [resolvable:$false] %s2102_s26 }
 0x9f6   : > { %p2105_p0 = scmp.lt.s32.totalorder %s2793_s22, %s2103_s26 }
 0xa6c   : > { %v1468_v54 = vpop.xlane.xlu0 %1467 }
 0xa6d   : > { %v1470_v55 = vsub.f32 %v1462_v47, %v1468_v54  ;;  %v1465_v56 = vpop.xlane.xlu1 %1464 }
 0xa6e   : > { %v1469_v57 = vsub.f32 %v1461_v48, %v1465_v56 }
 0xa6f   : > { %v1473_v58 = vmul.f32 1.442695, %v1470_v55 }
 0xa70   : > { %v1471_v33 = vmul.f32 1.442695, %v1469_v57  ;;  %v1357_v0 = vpop.permute.xlu0 %1356 }
 0xa71   : > { %2082 = vpow2.f32 %v1473_v58  ;;  %v1359_v63 = vpop.permute.xlu1 %1358  ;;  %v1362_v3 = vmul.f32 %v1357_v0, %v1326_v23 }
 0xa72   : > { %2084 = vpow2.f32 %v1471_v33  ;;  %v1363_v4 = vmul.f32 %v1359_v63, %v1327_v28 }
 0xa7b   : > { %v2083_v59 = vpop.eup %2082 }
 0xa7c   : > { %v2085_v60 = vpop.eup %2084  ;;  %v1478_v61 = vsel %vm671_vm2, %v2083_v59, 0.0 }
 0xa7d   : > { %1479 = vadd.xlane.f32.xlu1 %v1478_v61  ;;  %v1475_v62 = vsel %vm671_vm2, %v2085_v60, 0.0 }
 0xa7e   : > { %1476 = vadd.xlane.f32.xlu0 %v1475_v62 }
 0xa8e   : > { %1364 = vrot.lane.b32.xlu1 %v2741_v14, %s2177_s28 }
 0xa94   : > { %1366 = vrot.lane.b32.xlu0 %v2746_v15, %s2177_s28  ;;  %s2104_s28 = scalar_lea.vmem %s2103_s26, 1024 }
 0xa95   : > { %p2106_p1 = scmp.lt.s32.totalorder %s2104_s28, %s2098_s29 }
 0xa97   : > { %p2107_p2 = por %p2106_p1, %p2105_p0 }
 0xa99   : > { %p2108_p3 = pnand %p2107_p2, %p2101_p13 }
 0xb0a   : > { %v1480_v1 = vpop.xlane.xlu1 %1479 }
 0xb0b   : > { %2086 = vrcp.f32 %v1480_v1  ;;  %v1477_v2 = vpop.xlane.xlu0 %1476 }
 0xb0c   : > { %2088 = vrcp.f32 %v1477_v2 }
 0xb0e   : > { %v1365_v5 = vpop.permute.xlu1 %1364 }
 0xb0f   : > { %v1370_v6 = vadd.f32 %v1365_v5, %v1362_v3  ;;  %v1367_v7 = vpop.permute.xlu0 %1366 }
 0xb10   : > { %v1371_v8 = vadd.f32 %v1367_v7, %v1363_v4 }
 0xb12   : > { %v2001_v9 = vpack.c.bf16 %v1371_v8, %v1370_v6 }
 0xb14   : > { %2002 = vmatprep.subr.bf16.mxu0 %v2001_v9 }
 0xb15   : > { %v2087_v10 = vpop.eup %2086  ;;  %2004 = vmatpush3.bf16.msra.mxu0 %v2001_v9 }
 0xb16   : > { %v2089_v11 = vpop.eup %2088  ;;  %v1484_v13 = vmul.f32 %v2087_v10, %v2083_v59 }
 0xb17   : > { %v1482_v12 = vmul.f32 %v2089_v11, %v2085_v60 }
 0xb19   : > { %1888 = vmatprep.mubr.msk.f32.mxu0 %vm671_vm2, %v1482_v12 }
 0xb1a   : > { %1889 = vmatmul.mubr.msk.f32.vlgmr.msra.gmra.mrb[14].mxu0 %vm671_vm2, %v1484_v13 }
 0xbed   : > { %v1890_v14 = vpop.f32.mrb[14].mxu0 }
 0xbee   : > { %v1557_v15 = vpop.f32.mrb[15].mxu0  ;;  %v1569_v16 = vsel %vm756_vm4, %v1890_v14, 0.0 }
 0xbef   : > { %1570 = vadd.xlane.f32.xlu0 %v1569_v16  ;;  %v1566_v19 = vsel %vm756_vm4, %v1557_v15, 0.0 }
 0xbf0   : > { %1567 = vadd.xlane.f32.xlu1 %v1566_v19 }
 0xc7c   : > { %v1571_v20 = vpop.xlane.xlu0 %1570 }
 0xc7d   : > { %v1731_v21 = vmul.f32 -0.25, %v1571_v20  ;;  %v1568_v22 = vpop.xlane.xlu1 %1567 }
 0xc7e   : > { %v1730_v23 = vmul.f32 -0.25, %v1568_v22 }
 0xc7f   : > { %v1579_v24 = vmul.f32 1.442695, %v1731_v21 }
 0xc80   : > { %v1577_v26 = vmul.f32 1.442695, %v1730_v23 }
 0xc81   : > { %2090 = vpow2.f32 %v1579_v24 }
 0xc82   : > { %2092 = vpow2.f32 %v1577_v26 }
 0xc8b   : > { %v2091_v27 = vpop.eup %2090 }
 0xc8c   : > { %v2093_v28 = vpop.eup %2092  ;;  %v1582_v29 = vadd.f32 1.0, %v2091_v27 }
 0xc8d   : > { %v1581_v30 = vadd.f32 1.0, %v2093_v28 }
 0xc8e   : > { %2094 = vrcp.f32 %v1582_v29 }
 0xc8f   : > { %2096 = vrcp.f32 %v1581_v30 }
 0xc98   : > { %v2095_v18 = vpop.eup %2094 }
 0xc99   : > { %v2097_v31 = vpop.eup %2096  ;;  %v1589_v32 = vmul.f32 %v2095_v18, %v2709_v41  ;;  %v1590_v36 = vmul.f32 %v2095_v18, %v2712_v49 }
 0xc9a   : > { %v1587_v37 = vmul.f32 %v2097_v31, %v2702_v34  ;;  %v1588_v38 = vmul.f32 %v2097_v31, %v2704_v35 }
 0xc9b   : > { %1593 = vst [vmem:[%s325_s21 + $0x10] sm:$0xff] %v1589_v32  ;;  %1594 = vst [vmem:[%s325_s21 + $0x18] sm:$0xff] %v1590_v36 }
 0xc9c   : > { %1591 = vst [vmem:[%s325_s21] sm:$0xff] %v1587_v37  ;;  %1592 = vst [vmem:[%s325_s21 + $0x8] sm:$0xff] %v1588_v38 }
 0xc9d   : > { %2111 = shalt.err (!%p2108_p3)
}
 0xc9e   : > { %s2112_s25 = scalar_lea.hbm %s2791_s24, 512  ;;  %s2116_s21 = scalar_lea.hbm %s2847_s9, 1024 }
 0xc9f   : > { %p2113_p4 = scmp.ne.s32.totalorder %s2791_s24, %s2112_s25  ;;  %p2117_p9 = scmp.lt.u32.totalorder %s2791_s24, %s2847_s9 }
 0xca0   : > { %p2118_p10 = scmp.lt.u32.totalorder %s2116_s21, %s2112_s25  ;;  %p2120_p12 = scmp.lt.u32.totalorder %s2112_s25, %s2791_s24 }
 0xca1   : > { %p2114_p7 = pnand %p2113_p4, %p2269_p5 }
 0xca2   : > { %p2119_p11 = por %p2118_p10, %p2117_p9 }
 0xca3   : > { %p2115_p8 = pneg %p2114_p7 }
 0xca4   : > { %p2121_p13 = por %p2120_p12, %p2119_p11 }
 0xca6   : > { %p2122_p0 = pnand %p2121_p13, %p2115_p8 }
 0xca8   : > { %2125 = shalt.err (!%p2122_p0)
}
 0xca9   : > { %s2179_s29 = smov 256   ;;  %s2180_s14 = smov 16  }
 0xcaa   : > { %2005 = dma.vmem_to_hbm [thread:$0]  (%p2269_p5), %s2793_s22, 512, %s2791_s24, %s2797_s13, %s2179_s29, %s2179_s29, %s2180_s14  }
 0xcab PF: > { %p2011_p1 = scmp.ge.s32.totalorder %s2160_s12, 2  ;;  %s1624_s26 = sand.u32 1, %s2148_s30  }
 0xcac   : > { %s1625_s28 = scalar_lea.sflag [#allocation3], %s1624_s26 }
 0xcad   : > { %p2008_p2 = pnand %p2011_p1, %p2273_p6 }
 0xcaf   : > { %2143 = dma.done.wait (!%p2008_p2), %s1625_s28, 512  }
 0xcb0   : > { %2145 = vsyncadd (!%p2008_p2), %s1625_s28, 4294966784  ;;  %p19_p3 = scmp.ge.s32.totalorder %s2256_s15, 4   ;;  %s2853_s30 = smov %s2152_s10 }
 0xcb1   : > { %s2854_s10 = smov %s2156_s11  ;;  %s2855_s11 = smov %s2267_s18 }
 0xcb2   : > { %s2856_s12 = smov %s2256_s15  ;;  %21 = sbr.rel (!%p19_p3) target bundleno = 3 (0x3), region = 104 }
 0xcb9   :  { %1630 = vsyncpa [#allocation3], 1 }
 0xcba   :  { %1632 = vsyncpa [#allocation3 + $0x1], 1 }

</bundles_post_ra>
